<compile_context>
chip_gen: v6e
topology: v6e:2x2x1
jax: 0.10.0
libtpu: 0.0.40
codegen_flags: <defaults>
</compile_context>

<pallas_src>
import jax
import jax.numpy as jnp
import numpy as np
from jax import lax
from jax.experimental import pallas as pl
from jax.experimental.pallas import tpu as pltpu


# ----------------------------------------------------------------------------
# Fused kernel: LSTM recurrence + final Linear + CRF Viterbi decode.
# Runs once (no grid); all operands live in VMEM.
# ----------------------------------------------------------------------------
def lstm_crf_kernel(x_ref, wih_ref, whh_ref, b_ref, wfc_ref, bfc_ref,
                    trans_ref, start_ref, end_ref,
                    logits_ref, tags_ref):
    B, T, D = x_ref.shape
    H = whh_ref.shape[0]
    C = trans_ref.shape[0]
    L = tags_ref.shape[1]

    # ---- hoisted input projection: one (B*T, D) @ (D, 4H) matmul ----------
    x_flat = x_ref[...].reshape(B * T, D)
    x_proj = (jnp.dot(x_flat, wih_ref[...], preferred_element_type=jnp.float32)
              + b_ref[...])                                  # (B*T, 4H)
    x_proj = x_proj.reshape(B, T, 4 * H)                     # row-major, layout no-op

    # ---- LSTM recurrence, fully unrolled (T is small & static) ------------
    whh = whh_ref[...]
    h = jnp.zeros((B, H), jnp.float32)
    c = jnp.zeros((B, H), jnp.float32)
    for t in range(T):
        gates = x_proj[:, t, :] + jnp.dot(
            h, whh, preferred_element_type=jnp.float32)      # (B, 4H) [i,f,g,o]
        i_g = jax.nn.sigmoid(gates[:, 0:H])
        f_g = jax.nn.sigmoid(gates[:, H:2 * H])
        g_g = jnp.tanh(gates[:, 2 * H:3 * H])
        o_g = jax.nn.sigmoid(gates[:, 3 * H:4 * H])
        c = f_g * c + i_g * g_g
        h = o_g * jnp.tanh(c)

    # ---- final Linear on last hidden state ---------------------------------
    logits_flat = (jnp.dot(h, wfc_ref[...],
                           preferred_element_type=jnp.float32)
                   + bfc_ref[...])                           # (B, OUT)
    logits_ref[...] = logits_flat

    # Per-output-step emissions: static lane slices of the flat logits.
    emissions = [logits_flat[:, l * C:(l + 1) * C] for l in range(L)]  # (B, C)

    # ---- CRF Viterbi forward pass (torchcrf semantics, mask = all ones) ----
    trans = trans_ref[...]                                   # (C, C)
    score = start_ref[...] + emissions[0]                    # (B, C)
    hist = []                                                # hist[k]: bptr for step k+1
    for t in range(1, L):
        cand = (score[:, :, None]
                + trans[None, :, :]
                + emissions[t][:, None, :])                  # (B, prev, next)
        best = jnp.max(cand, axis=1)                         # (B, C)
        iota_prev = lax.broadcasted_iota(jnp.int32, cand.shape, 1)
        idx = jnp.min(jnp.where(cand == best[:, None, :], iota_prev, C),
                      axis=1).astype(jnp.int32)              # first argmax (B, C)
        hist.append(idx)
        score = best

    final = score + end_ref[...]                             # (B, C)
    m = jnp.max(final, axis=1, keepdims=True)
    iota_c = lax.broadcasted_iota(jnp.int32, final.shape, 1)
    cur = jnp.min(jnp.where(final == m, iota_c, C),
                  axis=1, keepdims=True).astype(jnp.int32)   # (B, 1)

    # ---- backtrack (unrolled), one-hot gather of backpointers --------------
    col = lax.broadcasted_iota(jnp.int32, (B, L), 1)
    tags = jnp.where(col == L - 1, cur, 0)
    for t in range(L - 2, -1, -1):
        hist_t = hist[t]                                     # bptr for step t+1, (B, C)
        onehot = (lax.broadcasted_iota(jnp.int32, (B, C), 1) == cur)
        prev = jnp.sum(hist_t * onehot.astype(jnp.int32),
                       axis=1, keepdims=True)                # (B, 1)
        tags = jnp.where(col == t, prev, tags)
        cur = prev
    tags_ref[...] = tags


def lstm_crf_fused(x, wih_t, whh_t, b_lstm, wfc_t, b_fc,
                   transitions, start_t, end_t):
    B, T, D = x.shape
    H = whh_t.shape[0]
    OUT = wfc_t.shape[1]
    C = transitions.shape[0]
    L = OUT // C

    flops = (2 * B * T * D * 4 * H          # hoisted input projection
             + 2 * T * B * H * 4 * H        # recurrent matmuls
             + 12 * T * B * H               # gate elementwise
             + 2 * B * H * OUT              # fc
             + 4 * B * (L - 1) * C * C)     # viterbi
    transcendentals = 5 * T * B * H
    bytes_accessed = 4 * (x.size + wih_t.size + whh_t.size + b_lstm.size
                          + wfc_t.size + b_fc.size + transitions.size
                          + start_t.size + end_t.size + B * OUT) + 4 * B * L

    vspec = pl.BlockSpec(memory_space=pltpu.MemorySpace.VMEM)
    return pl.pallas_call(
        lstm_crf_kernel,
        out_shape=(jax.ShapeDtypeStruct((B, OUT), jnp.float32),
                   jax.ShapeDtypeStruct((B, L), jnp.int32)),
        in_specs=[vspec] * 9,
        out_specs=(vspec, vspec),
        cost_estimate=pl.CostEstimate(flops=flops,
                                      transcendentals=transcendentals,
                                      bytes_accessed=bytes_accessed),
    )(x, wih_t, whh_t, b_lstm, wfc_t, b_fc, transitions, start_t, end_t)


# ----------------------------------------------------------------------------
# Model wrapper (glue in plain JAX; no host-side transposes).
# ----------------------------------------------------------------------------
def lstm_crf_forward(params, x):
    B = x.shape[0]
    L = params["output_seq_length"]
    C = params["output_dim"]
    logits_flat, preds = lstm_crf_fused(
        x, params["w_ih_t"], params["w_hh_t"], params["b_lstm"],
        params["w_fc_t"], params["b_fc"], params["transitions"],
        params["start_transitions"], params["end_transitions"])
    logits = logits_flat.reshape(B, L, C)   # row-major reshape; metadata only
    return logits, preds


def init_params(key, input_dim, hidden_dim, output_dim, output_seq_length):
    k = 1.0 / np.sqrt(hidden_dim)
    keys = jax.random.split(key, 9)
    out = output_dim * output_seq_length
    u = lambda kk, shape, lo, hi: jax.random.uniform(
        kk, shape, jnp.float32, lo, hi)
    return {
        "w_ih_t": u(keys[0], (input_dim, 4 * hidden_dim), -k, k),
        "w_hh_t": u(keys[1], (hidden_dim, 4 * hidden_dim), -k, k),
        "b_lstm": (u(keys[2], (1, 4 * hidden_dim), -k, k)
                   + u(keys[3], (1, 4 * hidden_dim), -k, k)),
        "w_fc_t": u(keys[4], (hidden_dim, out), -k, k),
        "b_fc": u(keys[5], (1, out), -k, k),
        "transitions": u(keys[6], (output_dim, output_dim), -0.1, 0.1),
        "start_transitions": u(keys[7], (1, output_dim), -0.1, 0.1),
        "end_transitions": u(keys[8], (1, output_dim), -0.1, 0.1),
        "output_dim": output_dim,
        "output_seq_length": output_seq_length,
    }


# ----------------------------------------------------------------------------
# Pure-JAX / numpy references for correctness checking.
# ----------------------------------------------------------------------------
def ref_lstm_fc(params, x):
    B, T, D = x.shape
    H = params["w_hh_t"].shape[0]

    def step(carry, x_t):
        h, c = carry
        gates = (x_t @ params["w_ih_t"] + h @ params["w_hh_t"]
                 + params["b_lstm"][0])
        i = jax.nn.sigmoid(gates[:, :H])
        f = jax.nn.sigmoid(gates[:, H:2 * H])
        g = jnp.tanh(gates[:, 2 * H:3 * H])
        o = jax.nn.sigmoid(gates[:, 3 * H:])
        c = f * c + i * g
        h = o * jnp.tanh(c)
        return (h, c), None

    init = (jnp.zeros((B, H), jnp.float32), jnp.zeros((B, H), jnp.float32))
    (h, _), _ = lax.scan(step, init, jnp.transpose(x, (1, 0, 2)))
    return h @ params["w_fc_t"] + params["b_fc"][0]


def ref_viterbi(logits, trans, start, end):
    logits = np.asarray(logits, np.float32)
    trans = np.asarray(trans, np.float32)
    start = np.asarray(start, np.float32)
    end = np.asarray(end, np.float32)
    B, L, C = logits.shape
    preds = np.zeros((B, L), np.int32)
    for b in range(B):
        score = start[0] + logits[b, 0]
        hist = []
        for t in range(1, L):
            cand = score[:, None] + trans + logits[b, t][None, :]
            hist.append(np.argmax(cand, axis=0))
            score = np.max(cand, axis=0)
        score = score + end[0]
        best = int(np.argmax(score))
        tags = [best]
        for idx in reversed(hist):
            best = int(idx[best])
            tags.append(best)
        tags.reverse()
        preds[b] = np.array(tags, np.int32)
    return preds


if __name__ == "__main__":
    # Small shapes consistent with the module's forward.
    batch, seq_len, input_dim = 2, 8, 16
    hidden_dim, output_dim, output_seq_length = 32, 5, 6

    key = jax.random.PRNGKey(0)
    pkey, xkey = jax.random.split(key)
    params = init_params(pkey, input_dim, hidden_dim, output_dim,
                         output_seq_length)
    x = jax.random.normal(xkey, (batch, seq_len, input_dim), jnp.float32)

    logits, preds = lstm_crf_forward(params, x)
    logits = jax.block_until_ready(logits)
    preds = jax.block_until_ready(preds)

    # Correctness checks against plain-JAX / numpy references.
    with jax.default_matmul_precision("highest"):
        ref_logits = ref_lstm_fc(params, x).reshape(
            batch, output_seq_length, output_dim)
    np.testing.assert_allclose(np.asarray(logits), np.asarray(ref_logits),
                               rtol=1e-3, atol=1e-3)
    ref_preds = ref_viterbi(logits, params["transitions"],
                            params["start_transitions"],
                            params["end_transitions"])
    assert np.array_equal(np.asarray(preds), ref_preds), "viterbi mismatch"

    print("KERNEL_OK")
</pallas_src>

<mosaic_0001>
module attributes {stable_mosaic.version = 11 : i64} {
  func.func @lstm_crf_kernel(%arg0: memref<2x8x16xf32, #tpu.memory_space<vmem>>, %arg1: memref<16x128xf32, #tpu.memory_space<vmem>>, %arg2: memref<32x128xf32, #tpu.memory_space<vmem>>, %arg3: memref<1x128xf32, #tpu.memory_space<vmem>>, %arg4: memref<32x30xf32, #tpu.memory_space<vmem>>, %arg5: memref<1x30xf32, #tpu.memory_space<vmem>>, %arg6: memref<5x5xf32, #tpu.memory_space<vmem>>, %arg7: memref<1x5xf32, #tpu.memory_space<vmem>>, %arg8: memref<1x5xf32, #tpu.memory_space<vmem>>, %arg9: memref<2x30xf32, #tpu.memory_space<vmem>>, %arg10: memref<2x6xi32, #tpu.memory_space<vmem>>) attributes {dimension_semantics = [], scalar_prefetch = 0 : i64, scratch_operands = 0 : i64, tpu.core_type = #tpu.core_type<tc>} {
    %c0 = arith.constant 0 : index
    %c0_0 = arith.constant 0 : index
    %c0_1 = arith.constant 0 : index
    %0 = vector.load %arg0[%c0, %c0_0, %c0_1] : memref<2x8x16xf32, #tpu.memory_space<vmem>>, vector<2x8x16xf32>
    %1 = vector.shape_cast %0 : vector<2x8x16xf32> to vector<16x16xf32>
    %c0_2 = arith.constant 0 : index
    %c0_3 = arith.constant 0 : index
    %2 = vector.load %arg1[%c0_2, %c0_3] : memref<16x128xf32, #tpu.memory_space<vmem>>, vector<16x128xf32>
    %cst = arith.constant dense<0.000000e+00> : vector<16x128xf32>
    %3 = tpu.matmul %1, %2, %cst {dimension_numbers = #tpu.dot_dimension_numbers<[1], [0], [0], [1], [0, 0, 1, 1], [], []>} : vector<16x16xf32>, vector<16x128xf32>, vector<16x128xf32> -> vector<16x128xf32>
    %c0_4 = arith.constant 0 : index
    %c0_5 = arith.constant 0 : index
    %4 = vector.load %arg3[%c0_4, %c0_5] : memref<1x128xf32, #tpu.memory_space<vmem>>, vector<1x128xf32>
    %5 = vector.broadcast %4 : vector<1x128xf32> to vector<16x128xf32>
    %6 = arith.addf %3, %5 : vector<16x128xf32>
    %7 = vector.shape_cast %6 : vector<16x128xf32> to vector<2x8x128xf32>
    %c0_6 = arith.constant 0 : index
    %c0_7 = arith.constant 0 : index
    %8 = vector.load %arg2[%c0_6, %c0_7] : memref<32x128xf32, #tpu.memory_space<vmem>>, vector<32x128xf32>
    %cst_8 = arith.constant 0.000000e+00 : f32
    %9 = vector.broadcast %cst_8 : f32 to vector<2x32xf32>
    %cst_9 = arith.constant 0.000000e+00 : f32
    %10 = vector.broadcast %cst_9 : f32 to vector<2x32xf32>
    %11 = vector.extract_strided_slice %7 {offsets = [0, 0, 0], sizes = [2, 1, 128], strides = [1, 1, 1]} : vector<2x8x128xf32> to vector<2x1x128xf32>
    %12 = vector.shape_cast %11 : vector<2x1x128xf32> to vector<2x128xf32>
    %cst_10 = arith.constant dense<0.000000e+00> : vector<2x128xf32>
    %13 = tpu.matmul %9, %8, %cst_10 {dimension_numbers = #tpu.dot_dimension_numbers<[1], [0], [0], [1], [0, 0, 1, 1], [], []>} : vector<2x32xf32>, vector<32x128xf32>, vector<2x128xf32> -> vector<2x128xf32>
    %14 = arith.addf %12, %13 : vector<2x128xf32>
    %15 = vector.extract_strided_slice %14 {offsets = [0, 0], sizes = [2, 32], strides = [1, 1]} : vector<2x128xf32> to vector<2x32xf32>
    %16 = arith.negf %15 : vector<2x32xf32>
    %17 = math.exp %16 : vector<2x32xf32>
    %cst_11 = arith.constant 1.000000e+00 : f32
    %18 = vector.broadcast %cst_11 : f32 to vector<2x32xf32>
    %19 = arith.addf %18, %17 : vector<2x32xf32>
    %20 = arith.divf %18, %19 : vector<2x32xf32>
    %21 = vector.extract_strided_slice %14 {offsets = [0, 32], sizes = [2, 32], strides = [1, 1]} : vector<2x128xf32> to vector<2x32xf32>
    %22 = arith.negf %21 : vector<2x32xf32>
    %23 = math.exp %22 : vector<2x32xf32>
    %cst_12 = arith.constant 1.000000e+00 : f32
    %24 = vector.broadcast %cst_12 : f32 to vector<2x32xf32>
    %25 = arith.addf %24, %23 : vector<2x32xf32>
    %26 = arith.divf %24, %25 : vector<2x32xf32>
    %27 = vector.extract_strided_slice %14 {offsets = [0, 64], sizes = [2, 32], strides = [1, 1]} : vector<2x128xf32> to vector<2x32xf32>
    %28 = math.tanh %27 : vector<2x32xf32>
    %29 = vector.extract_strided_slice %14 {offsets = [0, 96], sizes = [2, 32], strides = [1, 1]} : vector<2x128xf32> to vector<2x32xf32>
    %30 = arith.negf %29 : vector<2x32xf32>
    %31 = math.exp %30 : vector<2x32xf32>
    %cst_13 = arith.constant 1.000000e+00 : f32
    %32 = vector.broadcast %cst_13 : f32 to vector<2x32xf32>
    %33 = arith.addf %32, %31 : vector<2x32xf32>
    %34 = arith.divf %32, %33 : vector<2x32xf32>
    %35 = arith.mulf %26, %10 : vector<2x32xf32>
    %36 = arith.mulf %20, %28 : vector<2x32xf32>
    %37 = arith.addf %35, %36 : vector<2x32xf32>
    %38 = math.tanh %37 : vector<2x32xf32>
    %39 = arith.mulf %34, %38 : vector<2x32xf32>
    %40 = vector.extract_strided_slice %7 {offsets = [0, 1, 0], sizes = [2, 1, 128], strides = [1, 1, 1]} : vector<2x8x128xf32> to vector<2x1x128xf32>
    %41 = vector.shape_cast %40 : vector<2x1x128xf32> to vector<2x128xf32>
    %cst_14 = arith.constant dense<0.000000e+00> : vector<2x128xf32>
    %42 = tpu.matmul %39, %8, %cst_14 {dimension_numbers = #tpu.dot_dimension_numbers<[1], [0], [0], [1], [0, 0, 1, 1], [], []>} : vector<2x32xf32>, vector<32x128xf32>, vector<2x128xf32> -> vector<2x128xf32>
    %43 = arith.addf %41, %42 : vector<2x128xf32>
    %44 = vector.extract_strided_slice %43 {offsets = [0, 0], sizes = [2, 32], strides = [1, 1]} : vector<2x128xf32> to vector<2x32xf32>
    %45 = arith.negf %44 : vector<2x32xf32>
    %46 = math.exp %45 : vector<2x32xf32>
    %cst_15 = arith.constant 1.000000e+00 : f32
    %47 = vector.broadcast %cst_15 : f32 to vector<2x32xf32>
    %48 = arith.addf %47, %46 : vector<2x32xf32>
    %49 = arith.divf %47, %48 : vector<2x32xf32>
    %50 = vector.extract_strided_slice %43 {offsets = [0, 32], sizes = [2, 32], strides = [1, 1]} : vector<2x128xf32> to vector<2x32xf32>
    %51 = arith.negf %50 : vector<2x32xf32>
    %52 = math.exp %51 : vector<2x32xf32>
    %cst_16 = arith.constant 1.000000e+00 : f32
    %53 = vector.broadcast %cst_16 : f32 to vector<2x32xf32>
    %54 = arith.addf %53, %52 : vector<2x32xf32>
    %55 = arith.divf %53, %54 : vector<2x32xf32>
    %56 = vector.extract_strided_slice %43 {offsets = [0, 64], sizes = [2, 32], strides = [1, 1]} : vector<2x128xf32> to vector<2x32xf32>
    %57 = math.tanh %56 : vector<2x32xf32>
    %58 = vector.extract_strided_slice %43 {offsets = [0, 96], sizes = [2, 32], strides = [1, 1]} : vector<2x128xf32> to vector<2x32xf32>
    %59 = arith.negf %58 : vector<2x32xf32>
    %60 = math.exp %59 : vector<2x32xf32>
    %cst_17 = arith.constant 1.000000e+00 : f32
    %61 = vector.broadcast %cst_17 : f32 to vector<2x32xf32>
    %62 = arith.addf %61, %60 : vector<2x32xf32>
    %63 = arith.divf %61, %62 : vector<2x32xf32>
    %64 = arith.mulf %55, %37 : vector<2x32xf32>
    %65 = arith.mulf %49, %57 : vector<2x32xf32>
    %66 = arith.addf %64, %65 : vector<2x32xf32>
    %67 = math.tanh %66 : vector<2x32xf32>
    %68 = arith.mulf %63, %67 : vector<2x32xf32>
    %69 = vector.extract_strided_slice %7 {offsets = [0, 2, 0], sizes = [2, 1, 128], strides = [1, 1, 1]} : vector<2x8x128xf32> to vector<2x1x128xf32>
    %70 = vector.shape_cast %69 : vector<2x1x128xf32> to vector<2x128xf32>
    %cst_18 = arith.constant dense<0.000000e+00> : vector<2x128xf32>
    %71 = tpu.matmul %68, %8, %cst_18 {dimension_numbers = #tpu.dot_dimension_numbers<[1], [0], [0], [1], [0, 0, 1, 1], [], []>} : vector<2x32xf32>, vector<32x128xf32>, vector<2x128xf32> -> vector<2x128xf32>
    %72 = arith.addf %70, %71 : vector<2x128xf32>
    %73 = vector.extract_strided_slice %72 {offsets = [0, 0], sizes = [2, 32], strides = [1, 1]} : vector<2x128xf32> to vector<2x32xf32>
    %74 = arith.negf %73 : vector<2x32xf32>
    %75 = math.exp %74 : vector<2x32xf32>
    %cst_19 = arith.constant 1.000000e+00 : f32
    %76 = vector.broadcast %cst_19 : f32 to vector<2x32xf32>
    %77 = arith.addf %76, %75 : vector<2x32xf32>
    %78 = arith.divf %76, %77 : vector<2x32xf32>
    %79 = vector.extract_strided_slice %72 {offsets = [0, 32], sizes = [2, 32], strides = [1, 1]} : vector<2x128xf32> to vector<2x32xf32>
    %80 = arith.negf %79 : vector<2x32xf32>
    %81 = math.exp %80 : vector<2x32xf32>
    %cst_20 = arith.constant 1.000000e+00 : f32
    %82 = vector.broadcast %cst_20 : f32 to vector<2x32xf32>
    %83 = arith.addf %82, %81 : vector<2x32xf32>
    %84 = arith.divf %82, %83 : vector<2x32xf32>
    %85 = vector.extract_strided_slice %72 {offsets = [0, 64], sizes = [2, 32], strides = [1, 1]} : vector<2x128xf32> to vector<2x32xf32>
    %86 = math.tanh %85 : vector<2x32xf32>
    %87 = vector.extract_strided_slice %72 {offsets = [0, 96], sizes = [2, 32], strides = [1, 1]} : vector<2x128xf32> to vector<2x32xf32>
    %88 = arith.negf %87 : vector<2x32xf32>
    %89 = math.exp %88 : vector<2x32xf32>
    %cst_21 = arith.constant 1.000000e+00 : f32
    %90 = vector.broadcast %cst_21 : f32 to vector<2x32xf32>
    %91 = arith.addf %90, %89 : vector<2x32xf32>
    %92 = arith.divf %90, %91 : vector<2x32xf32>
    %93 = arith.mulf %84, %66 : vector<2x32xf32>
    %94 = arith.mulf %78, %86 : vector<2x32xf32>
    %95 = arith.addf %93, %94 : vector<2x32xf32>
    %96 = math.tanh %95 : vector<2x32xf32>
    %97 = arith.mulf %92, %96 : vector<2x32xf32>
    %98 = vector.extract_strided_slice %7 {offsets = [0, 3, 0], sizes = [2, 1, 128], strides = [1, 1, 1]} : vector<2x8x128xf32> to vector<2x1x128xf32>
    %99 = vector.shape_cast %98 : vector<2x1x128xf32> to vector<2x128xf32>
    %cst_22 = arith.constant dense<0.000000e+00> : vector<2x128xf32>
    %100 = tpu.matmul %97, %8, %cst_22 {dimension_numbers = #tpu.dot_dimension_numbers<[1], [0], [0], [1], [0, 0, 1, 1], [], []>} : vector<2x32xf32>, vector<32x128xf32>, vector<2x128xf32> -> vector<2x128xf32>
    %101 = arith.addf %99, %100 : vector<2x128xf32>
    %102 = vector.extract_strided_slice %101 {offsets = [0, 0], sizes = [2, 32], strides = [1, 1]} : vector<2x128xf32> to vector<2x32xf32>
    %103 = arith.negf %102 : vector<2x32xf32>
    %104 = math.exp %103 : vector<2x32xf32>
    %cst_23 = arith.constant 1.000000e+00 : f32
    %105 = vector.broadcast %cst_23 : f32 to vector<2x32xf32>
    %106 = arith.addf %105, %104 : vector<2x32xf32>
    %107 = arith.divf %105, %106 : vector<2x32xf32>
    %108 = vector.extract_strided_slice %101 {offsets = [0, 32], sizes = [2, 32], strides = [1, 1]} : vector<2x128xf32> to vector<2x32xf32>
    %109 = arith.negf %108 : vector<2x32xf32>
    %110 = math.exp %109 : vector<2x32xf32>
    %cst_24 = arith.constant 1.000000e+00 : f32
    %111 = vector.broadcast %cst_24 : f32 to vector<2x32xf32>
    %112 = arith.addf %111, %110 : vector<2x32xf32>
    %113 = arith.divf %111, %112 : vector<2x32xf32>
    %114 = vector.extract_strided_slice %101 {offsets = [0, 64], sizes = [2, 32], strides = [1, 1]} : vector<2x128xf32> to vector<2x32xf32>
    %115 = math.tanh %114 : vector<2x32xf32>
    %116 = vector.extract_strided_slice %101 {offsets = [0, 96], sizes = [2, 32], strides = [1, 1]} : vector<2x128xf32> to vector<2x32xf32>
    %117 = arith.negf %116 : vector<2x32xf32>
    %118 = math.exp %117 : vector<2x32xf32>
    %cst_25 = arith.constant 1.000000e+00 : f32
    %119 = vector.broadcast %cst_25 : f32 to vector<2x32xf32>
    %120 = arith.addf %119, %118 : vector<2x32xf32>
    %121 = arith.divf %119, %120 : vector<2x32xf32>
    %122 = arith.mulf %113, %95 : vector<2x32xf32>
    %123 = arith.mulf %107, %115 : vector<2x32xf32>
    %124 = arith.addf %122, %123 : vector<2x32xf32>
    %125 = math.tanh %124 : vector<2x32xf32>
    %126 = arith.mulf %121, %125 : vector<2x32xf32>
    %127 = vector.extract_strided_slice %7 {offsets = [0, 4, 0], sizes = [2, 1, 128], strides = [1, 1, 1]} : vector<2x8x128xf32> to vector<2x1x128xf32>
    %128 = vector.shape_cast %127 : vector<2x1x128xf32> to vector<2x128xf32>
    %cst_26 = arith.constant dense<0.000000e+00> : vector<2x128xf32>
    %129 = tpu.matmul %126, %8, %cst_26 {dimension_numbers = #tpu.dot_dimension_numbers<[1], [0], [0], [1], [0, 0, 1, 1], [], []>} : vector<2x32xf32>, vector<32x128xf32>, vector<2x128xf32> -> vector<2x128xf32>
    %130 = arith.addf %128, %129 : vector<2x128xf32>
    %131 = vector.extract_strided_slice %130 {offsets = [0, 0], sizes = [2, 32], strides = [1, 1]} : vector<2x128xf32> to vector<2x32xf32>
    %132 = arith.negf %131 : vector<2x32xf32>
    %133 = math.exp %132 : vector<2x32xf32>
    %cst_27 = arith.constant 1.000000e+00 : f32
    %134 = vector.broadcast %cst_27 : f32 to vector<2x32xf32>
    %135 = arith.addf %134, %133 : vector<2x32xf32>
    %136 = arith.divf %134, %135 : vector<2x32xf32>
    %137 = vector.extract_strided_slice %130 {offsets = [0, 32], sizes = [2, 32], strides = [1, 1]} : vector<2x128xf32> to vector<2x32xf32>
    %138 = arith.negf %137 : vector<2x32xf32>
    %139 = math.exp %138 : vector<2x32xf32>
    %cst_28 = arith.constant 1.000000e+00 : f32
    %140 = vector.broadcast %cst_28 : f32 to vector<2x32xf32>
    %141 = arith.addf %140, %139 : vector<2x32xf32>
    %142 = arith.divf %140, %141 : vector<2x32xf32>
    %143 = vector.extract_strided_slice %130 {offsets = [0, 64], sizes = [2, 32], strides = [1, 1]} : vector<2x128xf32> to vector<2x32xf32>
    %144 = math.tanh %143 : vector<2x32xf32>
    %145 = vector.extract_strided_slice %130 {offsets = [0, 96], sizes = [2, 32], strides = [1, 1]} : vector<2x128xf32> to vector<2x32xf32>
    %146 = arith.negf %145 : vector<2x32xf32>
    %147 = math.exp %146 : vector<2x32xf32>
    %cst_29 = arith.constant 1.000000e+00 : f32
    %148 = vector.broadcast %cst_29 : f32 to vector<2x32xf32>
    %149 = arith.addf %148, %147 : vector<2x32xf32>
    %150 = arith.divf %148, %149 : vector<2x32xf32>
    %151 = arith.mulf %142, %124 : vector<2x32xf32>
    %152 = arith.mulf %136, %144 : vector<2x32xf32>
    %153 = arith.addf %151, %152 : vector<2x32xf32>
    %154 = math.tanh %153 : vector<2x32xf32>
    %155 = arith.mulf %150, %154 : vector<2x32xf32>
    %156 = vector.extract_strided_slice %7 {offsets = [0, 5, 0], sizes = [2, 1, 128], strides = [1, 1, 1]} : vector<2x8x128xf32> to vector<2x1x128xf32>
    %157 = vector.shape_cast %156 : vector<2x1x128xf32> to vector<2x128xf32>
    %cst_30 = arith.constant dense<0.000000e+00> : vector<2x128xf32>
    %158 = tpu.matmul %155, %8, %cst_30 {dimension_numbers = #tpu.dot_dimension_numbers<[1], [0], [0], [1], [0, 0, 1, 1], [], []>} : vector<2x32xf32>, vector<32x128xf32>, vector<2x128xf32> -> vector<2x128xf32>
    %159 = arith.addf %157, %158 : vector<2x128xf32>
    %160 = vector.extract_strided_slice %159 {offsets = [0, 0], sizes = [2, 32], strides = [1, 1]} : vector<2x128xf32> to vector<2x32xf32>
    %161 = arith.negf %160 : vector<2x32xf32>
    %162 = math.exp %161 : vector<2x32xf32>
    %cst_31 = arith.constant 1.000000e+00 : f32
    %163 = vector.broadcast %cst_31 : f32 to vector<2x32xf32>
    %164 = arith.addf %163, %162 : vector<2x32xf32>
    %165 = arith.divf %163, %164 : vector<2x32xf32>
    %166 = vector.extract_strided_slice %159 {offsets = [0, 32], sizes = [2, 32], strides = [1, 1]} : vector<2x128xf32> to vector<2x32xf32>
    %167 = arith.negf %166 : vector<2x32xf32>
    %168 = math.exp %167 : vector<2x32xf32>
    %cst_32 = arith.constant 1.000000e+00 : f32
    %169 = vector.broadcast %cst_32 : f32 to vector<2x32xf32>
    %170 = arith.addf %169, %168 : vector<2x32xf32>
    %171 = arith.divf %169, %170 : vector<2x32xf32>
    %172 = vector.extract_strided_slice %159 {offsets = [0, 64], sizes = [2, 32], strides = [1, 1]} : vector<2x128xf32> to vector<2x32xf32>
    %173 = math.tanh %172 : vector<2x32xf32>
    %174 = vector.extract_strided_slice %159 {offsets = [0, 96], sizes = [2, 32], strides = [1, 1]} : vector<2x128xf32> to vector<2x32xf32>
    %175 = arith.negf %174 : vector<2x32xf32>
    %176 = math.exp %175 : vector<2x32xf32>
    %cst_33 = arith.constant 1.000000e+00 : f32
    %177 = vector.broadcast %cst_33 : f32 to vector<2x32xf32>
    %178 = arith.addf %177, %176 : vector<2x32xf32>
    %179 = arith.divf %177, %178 : vector<2x32xf32>
    %180 = arith.mulf %171, %153 : vector<2x32xf32>
    %181 = arith.mulf %165, %173 : vector<2x32xf32>
    %182 = arith.addf %180, %181 : vector<2x32xf32>
    %183 = math.tanh %182 : vector<2x32xf32>
    %184 = arith.mulf %179, %183 : vector<2x32xf32>
    %185 = vector.extract_strided_slice %7 {offsets = [0, 6, 0], sizes = [2, 1, 128], strides = [1, 1, 1]} : vector<2x8x128xf32> to vector<2x1x128xf32>
    %186 = vector.shape_cast %185 : vector<2x1x128xf32> to vector<2x128xf32>
    %cst_34 = arith.constant dense<0.000000e+00> : vector<2x128xf32>
    %187 = tpu.matmul %184, %8, %cst_34 {dimension_numbers = #tpu.dot_dimension_numbers<[1], [0], [0], [1], [0, 0, 1, 1], [], []>} : vector<2x32xf32>, vector<32x128xf32>, vector<2x128xf32> -> vector<2x128xf32>
    %188 = arith.addf %186, %187 : vector<2x128xf32>
    %189 = vector.extract_strided_slice %188 {offsets = [0, 0], sizes = [2, 32], strides = [1, 1]} : vector<2x128xf32> to vector<2x32xf32>
    %190 = arith.negf %189 : vector<2x32xf32>
    %191 = math.exp %190 : vector<2x32xf32>
    %cst_35 = arith.constant 1.000000e+00 : f32
    %192 = vector.broadcast %cst_35 : f32 to vector<2x32xf32>
    %193 = arith.addf %192, %191 : vector<2x32xf32>
    %194 = arith.divf %192, %193 : vector<2x32xf32>
    %195 = vector.extract_strided_slice %188 {offsets = [0, 32], sizes = [2, 32], strides = [1, 1]} : vector<2x128xf32> to vector<2x32xf32>
    %196 = arith.negf %195 : vector<2x32xf32>
    %197 = math.exp %196 : vector<2x32xf32>
    %cst_36 = arith.constant 1.000000e+00 : f32
    %198 = vector.broadcast %cst_36 : f32 to vector<2x32xf32>
    %199 = arith.addf %198, %197 : vector<2x32xf32>
    %200 = arith.divf %198, %199 : vector<2x32xf32>
    %201 = vector.extract_strided_slice %188 {offsets = [0, 64], sizes = [2, 32], strides = [1, 1]} : vector<2x128xf32> to vector<2x32xf32>
    %202 = math.tanh %201 : vector<2x32xf32>
    %203 = vector.extract_strided_slice %188 {offsets = [0, 96], sizes = [2, 32], strides = [1, 1]} : vector<2x128xf32> to vector<2x32xf32>
    %204 = arith.negf %203 : vector<2x32xf32>
    %205 = math.exp %204 : vector<2x32xf32>
    %cst_37 = arith.constant 1.000000e+00 : f32
    %206 = vector.broadcast %cst_37 : f32 to vector<2x32xf32>
    %207 = arith.addf %206, %205 : vector<2x32xf32>
    %208 = arith.divf %206, %207 : vector<2x32xf32>
    %209 = arith.mulf %200, %182 : vector<2x32xf32>
    %210 = arith.mulf %194, %202 : vector<2x32xf32>
    %211 = arith.addf %209, %210 : vector<2x32xf32>
    %212 = math.tanh %211 : vector<2x32xf32>
    %213 = arith.mulf %208, %212 : vector<2x32xf32>
    %214 = vector.extract_strided_slice %7 {offsets = [0, 7, 0], sizes = [2, 1, 128], strides = [1, 1, 1]} : vector<2x8x128xf32> to vector<2x1x128xf32>
    %215 = vector.shape_cast %214 : vector<2x1x128xf32> to vector<2x128xf32>
    %cst_38 = arith.constant dense<0.000000e+00> : vector<2x128xf32>
    %216 = tpu.matmul %213, %8, %cst_38 {dimension_numbers = #tpu.dot_dimension_numbers<[1], [0], [0], [1], [0, 0, 1, 1], [], []>} : vector<2x32xf32>, vector<32x128xf32>, vector<2x128xf32> -> vector<2x128xf32>
    %217 = arith.addf %215, %216 : vector<2x128xf32>
    %218 = vector.extract_strided_slice %217 {offsets = [0, 0], sizes = [2, 32], strides = [1, 1]} : vector<2x128xf32> to vector<2x32xf32>
    %219 = arith.negf %218 : vector<2x32xf32>
    %220 = math.exp %219 : vector<2x32xf32>
    %cst_39 = arith.constant 1.000000e+00 : f32
    %221 = vector.broadcast %cst_39 : f32 to vector<2x32xf32>
    %222 = arith.addf %221, %220 : vector<2x32xf32>
    %223 = arith.divf %221, %222 : vector<2x32xf32>
    %224 = vector.extract_strided_slice %217 {offsets = [0, 32], sizes = [2, 32], strides = [1, 1]} : vector<2x128xf32> to vector<2x32xf32>
    %225 = arith.negf %224 : vector<2x32xf32>
    %226 = math.exp %225 : vector<2x32xf32>
    %cst_40 = arith.constant 1.000000e+00 : f32
    %227 = vector.broadcast %cst_40 : f32 to vector<2x32xf32>
    %228 = arith.addf %227, %226 : vector<2x32xf32>
    %229 = arith.divf %227, %228 : vector<2x32xf32>
    %230 = vector.extract_strided_slice %217 {offsets = [0, 64], sizes = [2, 32], strides = [1, 1]} : vector<2x128xf32> to vector<2x32xf32>
    %231 = math.tanh %230 : vector<2x32xf32>
    %232 = vector.extract_strided_slice %217 {offsets = [0, 96], sizes = [2, 32], strides = [1, 1]} : vector<2x128xf32> to vector<2x32xf32>
    %233 = arith.negf %232 : vector<2x32xf32>
    %234 = math.exp %233 : vector<2x32xf32>
    %cst_41 = arith.constant 1.000000e+00 : f32
    %235 = vector.broadcast %cst_41 : f32 to vector<2x32xf32>
    %236 = arith.addf %235, %234 : vector<2x32xf32>
    %237 = arith.divf %235, %236 : vector<2x32xf32>
    %238 = arith.mulf %229, %211 : vector<2x32xf32>
    %239 = arith.mulf %223, %231 : vector<2x32xf32>
    %240 = arith.addf %238, %239 : vector<2x32xf32>
    %241 = math.tanh %240 : vector<2x32xf32>
    %242 = arith.mulf %237, %241 : vector<2x32xf32>
    %c0_42 = arith.constant 0 : index
    %c0_43 = arith.constant 0 : index
    %243 = vector.load %arg4[%c0_42, %c0_43] : memref<32x30xf32, #tpu.memory_space<vmem>>, vector<32x30xf32>
    %cst_44 = arith.constant dense<0.000000e+00> : vector<2x30xf32>
    %244 = tpu.matmul %242, %243, %cst_44 {dimension_numbers = #tpu.dot_dimension_numbers<[1], [0], [0], [1], [0, 0, 1, 1], [], []>} : vector<2x32xf32>, vector<32x30xf32>, vector<2x30xf32> -> vector<2x30xf32>
    %c0_45 = arith.constant 0 : index
    %c0_46 = arith.constant 0 : index
    %245 = vector.load %arg5[%c0_45, %c0_46] : memref<1x30xf32, #tpu.memory_space<vmem>>, vector<1x30xf32>
    %246 = vector.broadcast %245 : vector<1x30xf32> to vector<2x30xf32>
    %247 = arith.addf %244, %246 : vector<2x30xf32>
    %c0_47 = arith.constant 0 : index
    %c0_48 = arith.constant 0 : index
    %248 = vector.load %arg9[%c0_47, %c0_48] : memref<2x30xf32, #tpu.memory_space<vmem>>, vector<2x30xf32>
    tpu.vector_store %arg9[%c0_47, %c0_48], %247 {strides = array<i32>} : memref<2x30xf32, #tpu.memory_space<vmem>>, vector<2x30xf32>,
    %249 = vector.extract_strided_slice %247 {offsets = [0, 0], sizes = [2, 5], strides = [1, 1]} : vector<2x30xf32> to vector<2x5xf32>
    %250 = vector.extract_strided_slice %247 {offsets = [0, 5], sizes = [2, 5], strides = [1, 1]} : vector<2x30xf32> to vector<2x5xf32>
    %251 = vector.extract_strided_slice %247 {offsets = [0, 10], sizes = [2, 5], strides = [1, 1]} : vector<2x30xf32> to vector<2x5xf32>
    %252 = vector.extract_strided_slice %247 {offsets = [0, 15], sizes = [2, 5], strides = [1, 1]} : vector<2x30xf32> to vector<2x5xf32>
    %253 = vector.extract_strided_slice %247 {offsets = [0, 20], sizes = [2, 5], strides = [1, 1]} : vector<2x30xf32> to vector<2x5xf32>
    %254 = vector.extract_strided_slice %247 {offsets = [0, 25], sizes = [2, 5], strides = [1, 1]} : vector<2x30xf32> to vector<2x5xf32>
    %c0_49 = arith.constant 0 : index
    %c0_50 = arith.constant 0 : index
    %255 = vector.load %arg6[%c0_49, %c0_50] : memref<5x5xf32, #tpu.memory_space<vmem>>, vector<5x5xf32>
    %c0_51 = arith.constant 0 : index
    %c0_52 = arith.constant 0 : index
    %256 = vector.load %arg7[%c0_51, %c0_52] : memref<1x5xf32, #tpu.memory_space<vmem>>, vector<1x5xf32>
    %257 = vector.broadcast %256 : vector<1x5xf32> to vector<2x5xf32>
    %258 = arith.addf %257, %249 : vector<2x5xf32>
    %259 = vector.shape_cast %258 : vector<2x5xf32> to vector<2x5x1xf32>
    %260 = vector.shape_cast %255 : vector<5x5xf32> to vector<1x5x5xf32>
    %261 = vector.broadcast %259 : vector<2x5x1xf32> to vector<2x5x5xf32>
    %262 = vector.broadcast %260 : vector<1x5x5xf32> to vector<2x5x5xf32>
    %263 = arith.addf %261, %262 : vector<2x5x5xf32>
    %264 = vector.shape_cast %250 : vector<2x5xf32> to vector<2x1x5xf32>
    %265 = vector.broadcast %264 : vector<2x1x5xf32> to vector<2x5x5xf32>
    %266 = arith.addf %263, %265 : vector<2x5x5xf32>
    %cst_53 = arith.constant dense<0xFF800000> : vector<2x5xf32>
    %267 = vector.multi_reduction <maximumf>, %266, %cst_53 [1] : vector<2x5x5xf32> to vector<2x5xf32>
    %268 = tpu.iota {dimensions = array<i32: 1>} : vector<2x5x5xi32>
    %269 = vector.shape_cast %267 : vector<2x5xf32> to vector<2x1x5xf32>
    %270 = vector.broadcast %269 : vector<2x1x5xf32> to vector<2x5x5xf32>
    %271 = arith.cmpf oeq, %266, %270 : vector<2x5x5xf32>
    %c5_i32 = arith.constant 5 : i32
    %272 = vector.broadcast %c5_i32 : i32 to vector<2x5x5xi32>
    %273 = arith.select %271, %268, %272 : vector<2x5x5xi1>, vector<2x5x5xi32>
    %cst_54 = arith.constant dense<2147483647> : vector<2x5xi32>
    %274 = vector.multi_reduction <minsi>, %273, %cst_54 [1] : vector<2x5x5xi32> to vector<2x5xi32>
    %275 = vector.shape_cast %267 : vector<2x5xf32> to vector<2x5x1xf32>
    %276 = vector.shape_cast %255 : vector<5x5xf32> to vector<1x5x5xf32>
    %277 = vector.broadcast %275 : vector<2x5x1xf32> to vector<2x5x5xf32>
    %278 = vector.broadcast %276 : vector<1x5x5xf32> to vector<2x5x5xf32>
    %279 = arith.addf %277, %278 : vector<2x5x5xf32>
    %280 = vector.shape_cast %251 : vector<2x5xf32> to vector<2x1x5xf32>
    %281 = vector.broadcast %280 : vector<2x1x5xf32> to vector<2x5x5xf32>
    %282 = arith.addf %279, %281 : vector<2x5x5xf32>
    %cst_55 = arith.constant dense<0xFF800000> : vector<2x5xf32>
    %283 = vector.multi_reduction <maximumf>, %282, %cst_55 [1] : vector<2x5x5xf32> to vector<2x5xf32>
    %284 = tpu.iota {dimensions = array<i32: 1>} : vector<2x5x5xi32>
    %285 = vector.shape_cast %283 : vector<2x5xf32> to vector<2x1x5xf32>
    %286 = vector.broadcast %285 : vector<2x1x5xf32> to vector<2x5x5xf32>
    %287 = arith.cmpf oeq, %282, %286 : vector<2x5x5xf32>
    %c5_i32_56 = arith.constant 5 : i32
    %288 = vector.broadcast %c5_i32_56 : i32 to vector<2x5x5xi32>
    %289 = arith.select %287, %284, %288 : vector<2x5x5xi1>, vector<2x5x5xi32>
    %cst_57 = arith.constant dense<2147483647> : vector<2x5xi32>
    %290 = vector.multi_reduction <minsi>, %289, %cst_57 [1] : vector<2x5x5xi32> to vector<2x5xi32>
    %291 = vector.shape_cast %283 : vector<2x5xf32> to vector<2x5x1xf32>
    %292 = vector.shape_cast %255 : vector<5x5xf32> to vector<1x5x5xf32>
    %293 = vector.broadcast %291 : vector<2x5x1xf32> to vector<2x5x5xf32>
    %294 = vector.broadcast %292 : vector<1x5x5xf32> to vector<2x5x5xf32>
    %295 = arith.addf %293, %294 : vector<2x5x5xf32>
    %296 = vector.shape_cast %252 : vector<2x5xf32> to vector<2x1x5xf32>
    %297 = vector.broadcast %296 : vector<2x1x5xf32> to vector<2x5x5xf32>
    %298 = arith.addf %295, %297 : vector<2x5x5xf32>
    %cst_58 = arith.constant dense<0xFF800000> : vector<2x5xf32>
    %299 = vector.multi_reduction <maximumf>, %298, %cst_58 [1] : vector<2x5x5xf32> to vector<2x5xf32>
    %300 = tpu.iota {dimensions = array<i32: 1>} : vector<2x5x5xi32>
    %301 = vector.shape_cast %299 : vector<2x5xf32> to vector<2x1x5xf32>
    %302 = vector.broadcast %301 : vector<2x1x5xf32> to vector<2x5x5xf32>
    %303 = arith.cmpf oeq, %298, %302 : vector<2x5x5xf32>
    %c5_i32_59 = arith.constant 5 : i32
    %304 = vector.broadcast %c5_i32_59 : i32 to vector<2x5x5xi32>
    %305 = arith.select %303, %300, %304 : vector<2x5x5xi1>, vector<2x5x5xi32>
    %cst_60 = arith.constant dense<2147483647> : vector<2x5xi32>
    %306 = vector.multi_reduction <minsi>, %305, %cst_60 [1] : vector<2x5x5xi32> to vector<2x5xi32>
    %307 = vector.shape_cast %299 : vector<2x5xf32> to vector<2x5x1xf32>
    %308 = vector.shape_cast %255 : vector<5x5xf32> to vector<1x5x5xf32>
    %309 = vector.broadcast %307 : vector<2x5x1xf32> to vector<2x5x5xf32>
    %310 = vector.broadcast %308 : vector<1x5x5xf32> to vector<2x5x5xf32>
    %311 = arith.addf %309, %310 : vector<2x5x5xf32>
    %312 = vector.shape_cast %253 : vector<2x5xf32> to vector<2x1x5xf32>
    %313 = vector.broadcast %312 : vector<2x1x5xf32> to vector<2x5x5xf32>
    %314 = arith.addf %311, %313 : vector<2x5x5xf32>
    %cst_61 = arith.constant dense<0xFF800000> : vector<2x5xf32>
    %315 = vector.multi_reduction <maximumf>, %314, %cst_61 [1] : vector<2x5x5xf32> to vector<2x5xf32>
    %316 = tpu.iota {dimensions = array<i32: 1>} : vector<2x5x5xi32>
    %317 = vector.shape_cast %315 : vector<2x5xf32> to vector<2x1x5xf32>
    %318 = vector.broadcast %317 : vector<2x1x5xf32> to vector<2x5x5xf32>
    %319 = arith.cmpf oeq, %314, %318 : vector<2x5x5xf32>
    %c5_i32_62 = arith.constant 5 : i32
    %320 = vector.broadcast %c5_i32_62 : i32 to vector<2x5x5xi32>
    %321 = arith.select %319, %316, %320 : vector<2x5x5xi1>, vector<2x5x5xi32>
    %cst_63 = arith.constant dense<2147483647> : vector<2x5xi32>
    %322 = vector.multi_reduction <minsi>, %321, %cst_63 [1] : vector<2x5x5xi32> to vector<2x5xi32>
    %323 = vector.shape_cast %315 : vector<2x5xf32> to vector<2x5x1xf32>
    %324 = vector.shape_cast %255 : vector<5x5xf32> to vector<1x5x5xf32>
    %325 = vector.broadcast %323 : vector<2x5x1xf32> to vector<2x5x5xf32>
    %326 = vector.broadcast %324 : vector<1x5x5xf32> to vector<2x5x5xf32>
    %327 = arith.addf %325, %326 : vector<2x5x5xf32>
    %328 = vector.shape_cast %254 : vector<2x5xf32> to vector<2x1x5xf32>
    %329 = vector.broadcast %328 : vector<2x1x5xf32> to vector<2x5x5xf32>
    %330 = arith.addf %327, %329 : vector<2x5x5xf32>
    %cst_64 = arith.constant dense<0xFF800000> : vector<2x5xf32>
    %331 = vector.multi_reduction <maximumf>, %330, %cst_64 [1] : vector<2x5x5xf32> to vector<2x5xf32>
    %332 = tpu.iota {dimensions = array<i32: 1>} : vector<2x5x5xi32>
    %333 = vector.shape_cast %331 : vector<2x5xf32> to vector<2x1x5xf32>
    %334 = vector.broadcast %333 : vector<2x1x5xf32> to vector<2x5x5xf32>
    %335 = arith.cmpf oeq, %330, %334 : vector<2x5x5xf32>
    %c5_i32_65 = arith.constant 5 : i32
    %336 = vector.broadcast %c5_i32_65 : i32 to vector<2x5x5xi32>
    %337 = arith.select %335, %332, %336 : vector<2x5x5xi1>, vector<2x5x5xi32>
    %cst_66 = arith.constant dense<2147483647> : vector<2x5xi32>
    %338 = vector.multi_reduction <minsi>, %337, %cst_66 [1] : vector<2x5x5xi32> to vector<2x5xi32>
    %c0_67 = arith.constant 0 : index
    %c0_68 = arith.constant 0 : index
    %339 = vector.load %arg8[%c0_67, %c0_68] : memref<1x5xf32, #tpu.memory_space<vmem>>, vector<1x5xf32>
    %340 = vector.broadcast %339 : vector<1x5xf32> to vector<2x5xf32>
    %341 = arith.addf %331, %340 : vector<2x5xf32>
    %cst_69 = arith.constant dense<0xFF800000> : vector<2xf32>
    %342 = vector.multi_reduction <maximumf>, %341, %cst_69 [1] : vector<2x5xf32> to vector<2xf32>
    %343 = vector.shape_cast %342 : vector<2xf32> to vector<2x1xf32>
    %344 = tpu.iota {dimensions = array<i32: 1>} : vector<2x5xi32>
    %345 = vector.broadcast %343 : vector<2x1xf32> to vector<2x5xf32>
    %346 = arith.cmpf oeq, %341, %345 : vector<2x5xf32>
    %c5_i32_70 = arith.constant 5 : i32
    %347 = vector.broadcast %c5_i32_70 : i32 to vector<2x5xi32>
    %348 = arith.select %346, %344, %347 : vector<2x5xi1>, vector<2x5xi32>
    %cst_71 = arith.constant dense<2147483647> : vector<2xi32>
    %349 = vector.multi_reduction <minsi>, %348, %cst_71 [1] : vector<2x5xi32> to vector<2xi32>
    %350 = vector.shape_cast %349 : vector<2xi32> to vector<2x1xi32>
    %351 = tpu.iota {dimensions = array<i32: 1>} : vector<2x6xi32>
    %c5_i32_72 = arith.constant 5 : i32
    %352 = vector.broadcast %c5_i32_72 : i32 to vector<2x6xi32>
    %353 = arith.cmpi eq, %351, %352 : vector<2x6xi32>
    %c0_i32 = arith.constant 0 : i32
    %354 = vector.shape_cast %350 : vector<2x1xi32> to vector<2x1xi32>
    %355 = vector.broadcast %354 : vector<2x1xi32> to vector<2x6xi32>
    %356 = vector.broadcast %c0_i32 : i32 to vector<2x6xi32>
    %357 = arith.select %353, %355, %356 : vector<2x6xi1>, vector<2x6xi32>
    %358 = tpu.iota {dimensions = array<i32: 1>} : vector<2x5xi32>
    %359 = vector.broadcast %350 : vector<2x1xi32> to vector<2x5xi32>
    %360 = arith.cmpi eq, %358, %359 : vector<2x5xi32>
    %361 = arith.extui %360 : vector<2x5xi1> to vector<2x5xi32>
    %362 = arith.muli %338, %361 : vector<2x5xi32>
    %cst_73 = arith.constant dense<0> : vector<2xi32>
    %363 = vector.multi_reduction <add>, %362, %cst_73 [1] : vector<2x5xi32> to vector<2xi32>
    %364 = vector.shape_cast %363 : vector<2xi32> to vector<2x1xi32>
    %c4_i32 = arith.constant 4 : i32
    %365 = vector.broadcast %c4_i32 : i32 to vector<2x6xi32>
    %366 = arith.cmpi eq, %351, %365 : vector<2x6xi32>
    %367 = vector.shape_cast %364 : vector<2x1xi32> to vector<2x1xi32>
    %368 = vector.broadcast %367 : vector<2x1xi32> to vector<2x6xi32>
    %369 = arith.select %366, %368, %357 : vector<2x6xi1>, vector<2x6xi32>
    %370 = tpu.iota {dimensions = array<i32: 1>} : vector<2x5xi32>
    %371 = vector.broadcast %364 : vector<2x1xi32> to vector<2x5xi32>
    %372 = arith.cmpi eq, %370, %371 : vector<2x5xi32>
    %373 = arith.extui %372 : vector<2x5xi1> to vector<2x5xi32>
    %374 = arith.muli %322, %373 : vector<2x5xi32>
    %cst_74 = arith.constant dense<0> : vector<2xi32>
    %375 = vector.multi_reduction <add>, %374, %cst_74 [1] : vector<2x5xi32> to vector<2xi32>
    %376 = vector.shape_cast %375 : vector<2xi32> to vector<2x1xi32>
    %c3_i32 = arith.constant 3 : i32
    %377 = vector.broadcast %c3_i32 : i32 to vector<2x6xi32>
    %378 = arith.cmpi eq, %351, %377 : vector<2x6xi32>
    %379 = vector.shape_cast %376 : vector<2x1xi32> to vector<2x1xi32>
    %380 = vector.broadcast %379 : vector<2x1xi32> to vector<2x6xi32>
    %381 = arith.select %378, %380, %369 : vector<2x6xi1>, vector<2x6xi32>
    %382 = tpu.iota {dimensions = array<i32: 1>} : vector<2x5xi32>
    %383 = vector.broadcast %376 : vector<2x1xi32> to vector<2x5xi32>
    %384 = arith.cmpi eq, %382, %383 : vector<2x5xi32>
    %385 = arith.extui %384 : vector<2x5xi1> to vector<2x5xi32>
    %386 = arith.muli %306, %385 : vector<2x5xi32>
    %cst_75 = arith.constant dense<0> : vector<2xi32>
    %387 = vector.multi_reduction <add>, %386, %cst_75 [1] : vector<2x5xi32> to vector<2xi32>
    %388 = vector.shape_cast %387 : vector<2xi32> to vector<2x1xi32>
    %c2_i32 = arith.constant 2 : i32
    %389 = vector.broadcast %c2_i32 : i32 to vector<2x6xi32>
    %390 = arith.cmpi eq, %351, %389 : vector<2x6xi32>
    %391 = vector.shape_cast %388 : vector<2x1xi32> to vector<2x1xi32>
    %392 = vector.broadcast %391 : vector<2x1xi32> to vector<2x6xi32>
    %393 = arith.select %390, %392, %381 : vector<2x6xi1>, vector<2x6xi32>
    %394 = tpu.iota {dimensions = array<i32: 1>} : vector<2x5xi32>
    %395 = vector.broadcast %388 : vector<2x1xi32> to vector<2x5xi32>
    %396 = arith.cmpi eq, %394, %395 : vector<2x5xi32>
    %397 = arith.extui %396 : vector<2x5xi1> to vector<2x5xi32>
    %398 = arith.muli %290, %397 : vector<2x5xi32>
    %cst_76 = arith.constant dense<0> : vector<2xi32>
    %399 = vector.multi_reduction <add>, %398, %cst_76 [1] : vector<2x5xi32> to vector<2xi32>
    %400 = vector.shape_cast %399 : vector<2xi32> to vector<2x1xi32>
    %c1_i32 = arith.constant 1 : i32
    %401 = vector.broadcast %c1_i32 : i32 to vector<2x6xi32>
    %402 = arith.cmpi eq, %351, %401 : vector<2x6xi32>
    %403 = vector.shape_cast %400 : vector<2x1xi32> to vector<2x1xi32>
    %404 = vector.broadcast %403 : vector<2x1xi32> to vector<2x6xi32>
    %405 = arith.select %402, %404, %393 : vector<2x6xi1>, vector<2x6xi32>
    %406 = tpu.iota {dimensions = array<i32: 1>} : vector<2x5xi32>
    %407 = vector.broadcast %400 : vector<2x1xi32> to vector<2x5xi32>
    %408 = arith.cmpi eq, %406, %407 : vector<2x5xi32>
    %409 = arith.extui %408 : vector<2x5xi1> to vector<2x5xi32>
    %410 = arith.muli %274, %409 : vector<2x5xi32>
    %cst_77 = arith.constant dense<0> : vector<2xi32>
    %411 = vector.multi_reduction <add>, %410, %cst_77 [1] : vector<2x5xi32> to vector<2xi32>
    %412 = vector.shape_cast %411 : vector<2xi32> to vector<2x1xi32>
    %c0_i32_78 = arith.constant 0 : i32
    %413 = vector.broadcast %c0_i32_78 : i32 to vector<2x6xi32>
    %414 = arith.cmpi eq, %351, %413 : vector<2x6xi32>
    %415 = vector.shape_cast %412 : vector<2x1xi32> to vector<2x1xi32>
    %416 = vector.broadcast %415 : vector<2x1xi32> to vector<2x6xi32>
    %417 = arith.select %414, %416, %405 : vector<2x6xi1>, vector<2x6xi32>
    %c0_79 = arith.constant 0 : index
    %c0_80 = arith.constant 0 : index
    %418 = vector.load %arg10[%c0_79, %c0_80] : memref<2x6xi32, #tpu.memory_space<vmem>>, vector<2x6xi32>
    tpu.vector_store %arg10[%c0_79, %c0_80], %417 {strides = array<i32>} : memref<2x6xi32, #tpu.memory_space<vmem>>, vector<2x6xi32>,
    return
  }
}

</mosaic_0001>

<bundles_post_ra>
// kernel: tpu_custom_call.1
= control target key start
LH: loop header
LB: loop body
LE: loop exit
PB: predicated region body
PF: predicated region fallthrough
CT: control target
= control target key end

     0   :  { %16 = vsyncpa [#allocation3], 0  ;;  %s2852_s0 = inlined_call_operand.hbm [shape: f32[2,8,16], index: 0, kind: input, shape index: {}]   ;;  %s2853_s1 = inlined_call_operand.hbm [shape: f32[16,128], index: 1, kind: input, shape index: {}]   ;;  %s2854_s2 = inlined_call_operand.hbm [shape: f32[32,128], index: 2, kind: input, shape index: {}]   ;;  %s2855_s3 = inlined_call_operand.vmem [shape: f32[1,128], index: 3, kind: input, shape index: {}]   ;;  %s2856_s4 = inlined_call_operand.hbm [shape: f32[32,30], index: 4, kind: input, shape index: {}]   ;;  %s2857_s5 = inlined_call_operand.vmem [shape: f32[1,30], index: 5, kind: input, shape index: {}]   ;;  %s2858_s6 = inlined_call_operand.vmem [shape: f32[5,5], index: 6, kind: input, shape index: {}]   ;;  %s2859_s7 = inlined_call_operand.vmem [shape: f32[1,5], index: 7, kind: input, shape index: {}]   ;;  %s2860_s8 = inlined_call_operand.vmem [shape: f32[1,5], index: 8, kind: input, shape index: {}]   ;;  %s2861_s9 = inlined_call_operand.hbm [shape: f32[2,30], index: 9, kind: output, shape index: {0}]   ;;  %s2862_s10 = inlined_call_operand.hbm [shape: s32[2,6], index: 10, kind: output, shape index: {1}]  }
   0x1   :  { %17 = vsyncpa [#allocation6], 0 }
   0x2   :  { %18 = vsyncpa [#allocation9], 0 }
   0x3   :  { %19 = vsyncpa [#allocation4], 0 }
   0x4   :  { %20 = vsyncpa [#allocation12], 0  ;;  %s2359_s13 = smov [#allocation5]   ;;  %s2360_s15 = smov [#allocation2]  }
   0x5   :  { %s38_s14 = sshll.u32 %s2359_s13, 4  ;;  %s26_s16 = sshll.u32 %s2360_s15, 4  ;;  %s39_s14 = int_to_ptr.vmem [resolvable:$true] %s38_s14  ;;  %s27_s16 = int_to_ptr.vmem [resolvable:$true] %s26_s16 }
   0x6   :  { %s2237_s17 = scalar_lea.vmem %s39_s14, 256  ;;  %p2242_p1 = scmp.lt.s32.totalorder %s39_s14, %s39_s14 }
   0x7   :  { %p2238_p0 = scmp.ne.s32.totalorder %s39_s14, %s2237_s17  ;;  %p2243_p2 = scmp.lt.s32.totalorder %s2237_s17, %s2237_s17 }
   0x9   :  { %p2244_p3 = por %p2243_p2, %p2242_p1 }
   0xb   :  { %p2245_p4 = pnand %p2244_p3, %p2238_p0 }
   0xd   :  { %2248 = shalt.err (!%p2245_p4)
}
   0xe   :  { %s2361_s18 = smov 128   ;;  %s2362_s19 = smov 8  }
   0xf   :  { %44 = dma.hbm_to_vmem [thread:$0]  %s2853_s1, 256, %s39_s14, [#allocation6], %s2361_s18, %s2361_s18, %s2362_s19  }
  0x10   :  { %s2257_s22 = scalar_lea.vmem %s27_s16, 256  ;;  %p2262_p6 = scmp.lt.s32.totalorder %s27_s16, %s27_s16 }
  0x11   :  { %p2258_p5 = scmp.ne.s32.totalorder %s27_s16, %s2257_s22  ;;  %p2263_p7 = scmp.lt.s32.totalorder %s2257_s22, %s2257_s22 }
  0x13   :  { %p2264_p8 = por %p2263_p7, %p2262_p6 }
  0x15   :  { %p2265_p9 = pnand %p2264_p8, %p2258_p5 }
  0x17   :  { %2268 = shalt.err (!%p2265_p9)
}
  0x18   :  { %32 = dma.hbm_to_vmem [thread:$0]  %s2852_s0, 256, %s27_s16, [#allocation3], %s2361_s18, %s2361_s18, %s2362_s19  }
  0x19   :  { %s2363_s25 = smov [#allocation7]   ;;  %s2364_s27 = smov [#allocation8]  }
  0x1a   :  { %s50_s26 = sshll.u32 %s2363_s25, 4  ;;  %s64_s28 = sshll.u32 %s2364_s27, 4  ;;  %s51_s26 = int_to_ptr.vmem [resolvable:$true] %s50_s26  ;;  %s65_s28 = int_to_ptr.vmem [resolvable:$true] %s64_s28 }
  0x1b   :  { %s2277_s1 = scalar_lea.vmem %s51_s26, 512  ;;  %p2282_p11 = scmp.lt.s32.totalorder %s51_s26, %s51_s26 }
  0x1c   :  { %p2278_p10 = scmp.ne.s32.totalorder %s51_s26, %s2277_s1  ;;  %p2283_p12 = scmp.lt.s32.totalorder %s2277_s1, %s2277_s1 }
  0x1e   :  { %p2284_p13 = por %p2283_p12, %p2282_p11 }
  0x20   :  { %p2285_p0 = pnand %p2284_p13, %p2278_p10 }
  0x22   :  { %2288 = shalt.err (!%p2285_p0)
}
  0x23   :  { %56 = dma.hbm_to_vmem [thread:$0]  %s2854_s2, 512, %s51_s26, [#allocation6], %s2361_s18, %s2361_s18, %s2362_s19  }
  0x24   :  { %s2297_s0 = scalar_lea.vmem %s65_s28, 512  ;;  %p2302_p2 = scmp.lt.s32.totalorder %s65_s28, %s65_s28 }
  0x25   :  { %p2298_p1 = scmp.ne.s32.totalorder %s65_s28, %s2297_s0  ;;  %p2303_p3 = scmp.lt.s32.totalorder %s2297_s0, %s2297_s0 }
  0x27   :  { %p2304_p4 = por %p2303_p3, %p2302_p2 }
  0x29   :  { %p2305_p5 = pnand %p2304_p4, %p2298_p1 }
  0x2b   :  { %2308 = shalt.err (!%p2305_p5)
}
  0x2c   :  { %70 = dma.hbm_to_vmem [thread:$0]  %s2856_s4, 512, %s65_s28, [#allocation9], %s2361_s18, %s2361_s18, %s2362_s19  }
  0x2d   :  { %2349 = dma.done.wait [#allocation3], 256  }
  0x2e   :  { %2350 = vsyncadd [#allocation3], 4294967040 }
  0x2f   :  { %2351 = dma.done.wait [#allocation6], 768  }
  0x30   :  { %2352 = vsyncadd [#allocation6], 4294966528 }
  0x31   :  { %2353 = dma.done.wait [#allocation9], 512  }
  0x32   :  { %2354 = vsyncadd [#allocation9], 4294966784  ;;  %v2365_v0 = vmov 0.0   ;;  %vm2366_vm0 = vmmov 0   ;;  %v94_v1 = vld [vmem:[#allocation5 + $0x8] sm:$0xff]  ;;  %v93_v3 = vld [vmem:[#allocation5] sm:$0xff] }
  0x33   :  { %1983 = vmatprep.subr.mxu1 %v2365_v0  ;;  %1991 = vmatprep.mubr.msk.f32.mxu1 %vm2366_vm0, %v2365_v0  ;;  %v2460_v2 = vld [vmem:[#allocation7 + $0x18] sm:$0xff]  ;;  %v2463_v4 = vld [vmem:[#allocation7 + $0x10] sm:$0xff]  ;;  %v91_v5 = vld [vmem:[#allocation2] sm:$0xff]  ;;  %vm102_vm1 = vcmask 130048   ;;  %s2367_s13 = smov 64   ;;  %vm319_vm2 = vcmask 1041409  }
  0x34   :  { %1976 = vmatprep.subr.mxu0 %v94_v1  ;;  %1984 = vmatpush3.msra.mxu1 %v2460_v2  ;;  %v92_v6 = vld [vmem:[#allocation2 + $0x8] sm:$0xff]  ;;  %v2470_v8 = vld [vmem:[#allocation7] sm:$0xff]  ;;  %vm188_vm3 = vcmask 261120   ;;  %vm1384_vm4 = vcmask 238592   ;;  %vm1450_vm5 = vcmask 36864   ;;  %s2372_s19 = smov 113  }
  0x35   :  { %1977 = vmatpush3.msra.mxu0 %v94_v1  ;;  %1985 = vmatprep.subr.mxu1 %v2365_v0  ;;  %v2467_v7 = vld [vmem:[#allocation7 + $0x8] sm:$0xff]  ;;  %v1897_v10 = vld [vmem:[%s2855_s3] ss:$0 sm:$0xff]  ;;  %s2368_s3 = smov 32   ;;  %s2373_s20 = smov 108  }
  0x36   :  { %1978 = vmatprep.subr.mxu0 %v93_v3  ;;  %1986 = vmatpush3.msra.mxu1 %v2463_v4  ;;  %s2374_s21 = smov 103  }
  0x37   :  { %1979 = vmatpush3.msra.mxu0 %v93_v3  ;;  %1980 = vmatprep.mubr.msk.f32.mxu0 %vm102_vm1, %v91_v5 }
  0x38   :  { %1987 = vmatprep.subr.mxu1 %v2365_v0  ;;  %1981 = vmatmul.mubr.msk.f32.vlgmr.msra.gmra.mxu0 %vm102_vm1, %v92_v6 }
  0x39   :  { %1988 = vmatpush3.msra.mxu1 %v2467_v7  ;;  %1994 = vmatprep.subr.mxu0 %v2365_v0 }
  0x3a   :  { %1989 = vmatprep.subr.mxu1 %v2365_v0  ;;  %1995 = vmatpush3.msra.mxu0 %v2460_v2 }
  0x3b   :  { %1990 = vmatpush3.msra.mxu1 %v2470_v8  ;;  %1996 = vmatprep.subr.mxu0 %v2365_v0 }
  0x3c   :  { %1992 = vmatmul.mubr.f32.vlgmr.msra.gmra.mxu1 %v2365_v0  ;;  %1997 = vmatpush3.msra.mxu0 %v2463_v4 }
  0x3d   :  { %1998 = vmatprep.subr.mxu0 %v2365_v0  ;;  %2002 = vmatprep.mubr.msk.f32.mxu0 %vm2366_vm0, %v2365_v0 }
  0x3e   :  { %1999 = vmatpush3.msra.mxu0 %v2467_v7  ;;  %2005 = vmatprep.subr.mxu1 %v2365_v0 }
  0x3f   :  { %2000 = vmatprep.subr.mxu0 %v2365_v0  ;;  %2006 = vmatpush3.msra.mxu1 %v2460_v2 }
  0x40   :  { %2001 = vmatpush3.msra.mxu0 %v2470_v8  ;;  %2007 = vmatprep.subr.mxu1 %v2365_v0 }
  0x41   :  { %2008 = vmatpush3.msra.mxu1 %v2463_v4  ;;  %2013 = vmatprep.mubr.msk.f32.mxu1 %vm2366_vm0, %v2365_v0 }
  0x42   :  { %2009 = vmatprep.subr.mxu1 %v2365_v0  ;;  %2016 = vmatprep.subr.mxu0 %v2365_v0 }
  0x43   :  { %2010 = vmatpush3.msra.mxu1 %v2467_v7 }
  0x44   :  { %2011 = vmatprep.subr.mxu1 %v2365_v0 }
  0x45   :  { %2012 = vmatpush3.msra.mxu1 %v2470_v8 }
  0x46   :  { %2027 = vmatprep.subr.mxu1 %v2365_v0 }
  0xf8   :  { %v1982_v9 = vpop.f32.mrf.mxu0 }
  0xf9   :  { %v2501_v11 = vadd.f32 %v1982_v9, %v1897_v10 }
  0xfa   :  { %v175_v12 = vpop.f32.mrf.mxu0 }
  0xfb   :  { %v2503_v15 = vadd.f32 %v1897_v10, %v175_v12 }
  0xfc   :  { %v258_v13 = vpop.f32.mrf.mxu1 }
  0xfd   :  { %v263_v14 = vrot.slane %v258_v13, 1  ;;  %v266_v18 = vadd.f32 %v258_v13, %v2503_v15 }
  0xfe   :  { %v1993_v16 = vpop.f32.mrf.mxu1 }
  0xff   :  { %v267_v17 = vadd.f32 %v263_v14, %v2501_v11  ;;  %v1900_v22 = vmul.f32 -1.442695, %v266_v18 }
 0x101   :  { %2101 = vtanh.f32 %v267_v17  ;;  %v1901_v21 = vmul.f32 -1.442695, %v267_v17 }
 0x102   :  { %2103 = vtanh.f32 %v266_v18 }
 0x103   :  { %2105 = vpow2.f32 %v1901_v21 }
 0x104   :  { %2107 = vpow2.f32 %v1900_v22 }
 0x10e   :  { %v2102_v19 = vpop.eup %2101 }
 0x10f   :  { %288 = vrot.lane.b32.xlu0 %v2102_v19, %s2367_s13  ;;  %v2104_v20 = vpop.eup %2103 }
 0x110   :  { %v2106_v23 = vpop.eup %2105 }
 0x111   :  { %v275_v24 = vadd.f32 1.0, %v2106_v23  ;;  %v2108_v25 = vpop.eup %2107 }
 0x112   :  { %v274_v26 = vadd.f32 1.0, %v2108_v25 }
 0x113   :  { %286 = vrot.lane.b32.xlu0 %v2104_v20, %s2367_s13  ;;  %2109 = vrcp.f32 %v275_v24 }
 0x114   :  { %2111 = vrcp.f32 %v274_v26 }
 0x120   :  { %v2110_v27 = vpop.eup %2109 }
 0x121   :  { %v2112_v30 = vpop.eup %2111  ;;  %v283_v33 = vmul.f32 0.0, %v2110_v27 }
 0x122   :  { %v282_v36 = vmul.f32 0.0, %v2112_v30 }
 0x181   :  { %v289_v28 = vpop.permute.xlu0 %288 }
 0x182   :  { %v293_v29 = vmul.f32 %v2110_v27, %v289_v28 }
 0x184   :  { %298 = vrot.lane.b32.xlu1 %v293_v29, %s2368_s3 }
 0x185   :  { %v287_v31 = vpop.permute.xlu0 %286 }
 0x186   :  { %v292_v32 = vmul.f32 %v2112_v30, %v287_v31 }
 0x188   :  { %296 = vrot.lane.b32.xlu1 %v292_v32, %s2368_s3 }
 0x1f6   :  { %v299_v34 = vpop.permute.xlu1 %298 }
 0x1f7   :  { %v303_v35 = vadd.f32 %v299_v34, %v283_v33 }
 0x1f9   :  { %2113 = vtanh.f32 %v303_v35  ;;  %v418_v6 = vrot.slane %v303_v35, 7 }
 0x1fa   :  { %v297_v37 = vpop.permute.xlu1 %296 }
 0x1fb   :  { %v302_v38 = vadd.f32 %v297_v37, %v282_v36 }
 0x1fd   :  { %2115 = vtanh.f32 %v302_v38  ;;  %v417_v10 = vrot.slane %v302_v38, 7 }
 0x206   :  { %v2114_v39 = vpop.eup %2113 }
 0x207   :  { %310 = vrot.lane.b32.xlu0 %v2114_v39, %s2367_s13 }
 0x20a   :  { %v2116_v40 = vpop.eup %2115 }
 0x20b   :  { %308 = vrot.lane.b32.xlu1 %v2116_v40, %s2367_s13 }
 0x279   :  { %v311_v41 = vpop.permute.xlu0 %310 }
 0x27a   :  { %v315_v42 = vmul.f32 %v2110_v27, %v311_v41 }
 0x27c   :  { %v318_v44 = vrot.slane %v315_v42, 7 }
 0x27d   :  { %v309_v43 = vpop.permute.xlu1 %308 }
 0x27e   :  { %v314_v45 = vmul.f32 %v2112_v30, %v309_v43 }
 0x280   :  { %v320_v46 = vsel %vm319_vm2, %v318_v44, %v314_v45 }
 0x281   :  { %321 = vrot.lane.b32.xlu0 %v320_v46, %s2368_s3 }
 0x2f3   :  { %v322_v47 = vpop.permute.xlu0 %321 }
 0x2f4   :  { %2003 = vmatmul.mubr.msk.f32.vlgmr.msra.gmra.mxu0 %vm188_vm3, %v322_v47 }
 0x2f5   :  { %2017 = vmatpush3.msra.mxu0 %v2460_v2  ;;  %2024 = vmatprep.mubr.msk.f32.mxu0 %vm2366_vm0, %v2365_v0 }
 0x2f6   :  { %2018 = vmatprep.subr.mxu0 %v2365_v0 }
 0x2f7   :  { %2019 = vmatpush3.msra.mxu0 %v2463_v4 }
 0x2f8   :  { %2020 = vmatprep.subr.mxu0 %v2365_v0 }
 0x2f9   :  { %2021 = vmatpush3.msra.mxu0 %v2467_v7 }
 0x2fa   :  { %2022 = vmatprep.subr.mxu0 %v2365_v0 }
 0x2fb   :  { %2023 = vmatpush3.msra.mxu0 %v2470_v8 }
 0x2fc   :  { %2038 = vmatprep.subr.mxu0 %v2365_v0 }
 0x3b4   :  { %v391_v48 = vpop.f32.mrf.mxu0 }
 0x3b5   :  { %v396_v49 = vrot.slane %v391_v48, 7  ;;  %v400_v50 = vadd.f32 %v391_v48, %v2501_v11 }
 0x3b6   :  { %v2004_v51 = vpop.f32.mrf.mxu0 }
 0x3b7   :  { %v399_v52 = vadd.f32 %v396_v49, %v2503_v15  ;;  %2117 = vtanh.f32 %v400_v50  ;;  %v1904_v55 = vmul.f32 -1.442695, %v400_v50 }
 0x3b9   :  { %2119 = vtanh.f32 %v399_v52  ;;  %v1903_v56 = vmul.f32 -1.442695, %v399_v52 }
 0x3ba   :  { %2121 = vpow2.f32 %v1904_v55 }
 0x3bb   :  { %2123 = vpow2.f32 %v1903_v56 }
 0x3c4   :  { %v2118_v53 = vpop.eup %2117 }
 0x3c5   :  { %427 = vrot.lane.b32.xlu0 %v2118_v53, %s2367_s13 }
 0x3c6   :  { %v2120_v54 = vpop.eup %2119 }
 0x3c7   :  { %425 = vrot.lane.b32.xlu1 %v2120_v54, %s2367_s13  ;;  %v2122_v57 = vpop.eup %2121 }
 0x3c8   :  { %v2124_v58 = vpop.eup %2123  ;;  %v408_v59 = vadd.f32 1.0, %v2122_v57 }
 0x3c9   :  { %v407_v60 = vadd.f32 1.0, %v2124_v58 }
 0x3ca   :  { %2125 = vrcp.f32 %v408_v59 }
 0x3cb   :  { %2127 = vrcp.f32 %v407_v60 }
 0x3d7   :  { %v2126_v61 = vpop.eup %2125 }
 0x3d8   :  { %v2128_v1 = vpop.eup %2127  ;;  %v422_v9 = vmul.f32 %v2126_v61, %v418_v6 }
 0x3d9   :  { %v421_v14 = vmul.f32 %v2128_v1, %v417_v10 }
 0x437   :  { %v428_v62 = vpop.permute.xlu0 %427 }
 0x438   :  { %v432_v63 = vmul.f32 %v2126_v61, %v428_v62 }
 0x439   :  { %v426_v3 = vpop.permute.xlu1 %425 }
 0x43a   :  { %437 = vrot.lane.b32.xlu0 %v432_v63, %s2368_s3  ;;  %v431_v5 = vmul.f32 %v2128_v1, %v426_v3 }
 0x43c   :  { %435 = vrot.lane.b32.xlu1 %v431_v5, %s2368_s3 }
 0x4ac   :  { %v438_v12 = vpop.permute.xlu0 %437 }
 0x4ad   :  { %v442_v13 = vadd.f32 %v438_v12, %v422_v9 }
 0x4ae   :  { %v436_v16 = vpop.permute.xlu1 %435 }
 0x4af   :  { %2129 = vtanh.f32 %v442_v13  ;;  %v441_v17 = vadd.f32 %v436_v16, %v421_v14  ;;  %v557_v48 = vrot.slane %v442_v13, 7 }
 0x4b1   :  { %2131 = vtanh.f32 %v441_v17  ;;  %v556_v47 = vrot.slane %v441_v17, 7 }
 0x4bc   :  { %v2130_v18 = vpop.eup %2129 }
 0x4bd   :  { %449 = vrot.lane.b32.xlu0 %v2130_v18, %s2367_s13 }
 0x4be   :  { %v2132_v19 = vpop.eup %2131 }
 0x4bf   :  { %447 = vrot.lane.b32.xlu1 %v2132_v19, %s2367_s13 }
 0x52f   :  { %v450_v20 = vpop.permute.xlu0 %449 }
 0x530   :  { %v454_v23 = vmul.f32 %v2126_v61, %v450_v20 }
 0x531   :  { %v448_v21 = vpop.permute.xlu1 %447 }
 0x532   :  { %v453_v22 = vmul.f32 %v2128_v1, %v448_v21 }
 0x534   :  { %v457_v24 = vrot.slane %v453_v22, 1 }
 0x536   :  { %v458_v25 = vsel %vm319_vm2, %v454_v23, %v457_v24 }
 0x537   :  { %459 = vrot.lane.b32.xlu1 %v458_v25, %s2368_s3 }
 0x5a9   :  { %v460_v26 = vpop.permute.xlu1 %459 }
 0x5aa   :  { %2014 = vmatmul.mubr.msk.f32.vlgmr.msra.gmra.mxu1 %vm188_vm3, %v460_v26 }
 0x5ab   :  { %2028 = vmatpush3.msra.mxu1 %v2460_v2  ;;  %2035 = vmatprep.mubr.msk.f32.mxu1 %vm2366_vm0, %v2365_v0 }
 0x5ac   :  { %2029 = vmatprep.subr.mxu1 %v2365_v0 }
 0x5ad   :  { %2030 = vmatpush3.msra.mxu1 %v2463_v4 }
 0x5ae   :  { %2031 = vmatprep.subr.mxu1 %v2365_v0 }
 0x5af   :  { %2032 = vmatpush3.msra.mxu1 %v2467_v7 }
 0x5b0   :  { %2033 = vmatprep.subr.mxu1 %v2365_v0 }
 0x5b1   :  { %2034 = vmatpush3.msra.mxu1 %v2470_v8 }
 0x5b2   :  { %2049 = vmatprep.subr.mxu1 %v2365_v0 }
 0x66a   :  { %v529_v27 = vpop.f32.mrf.mxu1 }
 0x66b   :  { %v534_v28 = vrot.slane %v529_v27, 6  ;;  %v535_v29 = vrot.slane %v529_v27, 7 }
 0x66c   :  { %v2015_v30 = vpop.f32.mrf.mxu1 }
 0x66d   :  { %v538_v31 = vadd.f32 %v534_v28, %v2503_v15  ;;  %v539_v32 = vadd.f32 %v535_v29, %v2501_v11 }
 0x66f   :  { %2133 = vtanh.f32 %v538_v31  ;;  %v1906_v35 = vmul.f32 -1.442695, %v538_v31  ;;  %v1907_v36 = vmul.f32 -1.442695, %v539_v32 }
 0x670   :  { %2135 = vtanh.f32 %v539_v32 }
 0x671   :  { %2137 = vpow2.f32 %v1906_v35 }
 0x672   :  { %2139 = vpow2.f32 %v1907_v36 }
 0x67c   :  { %v2134_v33 = vpop.eup %2133 }
 0x67d   :  { %v2136_v34 = vpop.eup %2135  ;;  %564 = vrot.lane.b32.xlu0 %v2134_v33, %s2367_s13 }
 0x67e   :  { %566 = vrot.lane.b32.xlu1 %v2136_v34, %s2367_s13  ;;  %v2138_v37 = vpop.eup %2137 }
 0x67f   :  { %v2140_v38 = vpop.eup %2139  ;;  %v546_v39 = vadd.f32 1.0, %v2138_v37 }
 0x680   :  { %v547_v40 = vadd.f32 1.0, %v2140_v38 }
 0x681   :  { %2141 = vrcp.f32 %v546_v39 }
 0x682   :  { %2143 = vrcp.f32 %v547_v40 }
 0x68e   :  { %v2142_v41 = vpop.eup %2141 }
 0x68f   :  { %v2144_v43 = vpop.eup %2143  ;;  %v560_v49 = vmul.f32 %v2142_v41, %v556_v47 }
 0x690   :  { %v561_v50 = vmul.f32 %v2144_v43, %v557_v48 }
 0x6ef   :  { %v565_v42 = vpop.permute.xlu0 %564 }
 0x6f0   :  { %v567_v44 = vpop.permute.xlu1 %566  ;;  %v570_v45 = vmul.f32 %v2142_v41, %v565_v42 }
 0x6f1   :  { %v571_v46 = vmul.f32 %v2144_v43, %v567_v44 }
 0x6f2   :  { %574 = vrot.lane.b32.xlu0 %v570_v45, %s2368_s3 }
 0x6f3   :  { %576 = vrot.lane.b32.xlu1 %v571_v46, %s2368_s3 }
 0x764   :  { %v575_v51 = vpop.permute.xlu0 %574 }
 0x765   :  { %v577_v52 = vpop.permute.xlu1 %576  ;;  %v580_v53 = vadd.f32 %v575_v51, %v560_v49 }
 0x766   :  { %v581_v54 = vadd.f32 %v577_v52, %v561_v50 }
 0x767   :  { %2145 = vtanh.f32 %v580_v53  ;;  %v696_v28 = vrot.slane %v580_v53, 7 }
 0x768   :  { %2147 = vtanh.f32 %v581_v54  ;;  %v697_v29 = vrot.slane %v581_v54, 7 }
 0x774   :  { %v2146_v55 = vpop.eup %2145 }
 0x775   :  { %v2148_v56 = vpop.eup %2147  ;;  %586 = vrot.lane.b32.xlu0 %v2146_v55, %s2367_s13 }
 0x776   :  { %588 = vrot.lane.b32.xlu1 %v2148_v56, %s2367_s13 }
 0x7e7   :  { %v587_v57 = vpop.permute.xlu0 %586 }
 0x7e8   :  { %v589_v58 = vpop.permute.xlu1 %588  ;;  %v592_v59 = vmul.f32 %v2142_v41, %v587_v57 }
 0x7e9   :  { %v593_v60 = vmul.f32 %v2144_v43, %v589_v58 }
 0x7ea   :  { %v596_v61 = vrot.slane %v592_v59, 2 }
 0x7eb   :  { %v597_v62 = vrot.slane %v593_v60, 1 }
 0x7ed   :  { %v598_v63 = vsel %vm319_vm2, %v597_v62, %v596_v61 }
 0x7ee   :  { %599 = vrot.lane.b32.xlu0 %v598_v63, %s2368_s3 }
 0x860   :  { %v600_v1 = vpop.permute.xlu0 %599 }
 0x861   :  { %2025 = vmatmul.mubr.msk.f32.vlgmr.msra.gmra.mxu0 %vm188_vm3, %v600_v1 }
 0x862   :  { %2039 = vmatpush3.msra.mxu0 %v2460_v2  ;;  %2046 = vmatprep.mubr.msk.f32.mxu0 %vm2366_vm0, %v2365_v0 }
 0x863   :  { %2040 = vmatprep.subr.mxu0 %v2365_v0 }
 0x864   :  { %2041 = vmatpush3.msra.mxu0 %v2463_v4 }
 0x865   :  { %2042 = vmatprep.subr.mxu0 %v2365_v0 }
 0x866   :  { %2043 = vmatpush3.msra.mxu0 %v2467_v7 }
 0x867   :  { %2044 = vmatprep.subr.mxu0 %v2365_v0 }
 0x868   :  { %2045 = vmatpush3.msra.mxu0 %v2470_v8 }
 0x869   :  { %2060 = vmatprep.subr.mxu0 %v2365_v0 }
 0x921   :  { %v669_v3 = vpop.f32.mrf.mxu0 }
 0x922   :  { %v674_v5 = vrot.slane %v669_v3, 5  ;;  %v675_v6 = vrot.slane %v669_v3, 6 }
 0x923   :  { %v2026_v9 = vpop.f32.mrf.mxu0 }
 0x924   :  { %v678_v10 = vadd.f32 %v674_v5, %v2503_v15  ;;  %v679_v12 = vadd.f32 %v675_v6, %v2501_v11 }
 0x926   :  { %2149 = vtanh.f32 %v678_v10  ;;  %v1909_v16 = vmul.f32 -1.442695, %v678_v10  ;;  %v1910_v17 = vmul.f32 -1.442695, %v679_v12 }
 0x927   :  { %2151 = vtanh.f32 %v679_v12 }
 0x928   :  { %2153 = vpow2.f32 %v1909_v16 }
 0x929   :  { %2155 = vpow2.f32 %v1910_v17 }
 0x933   :  { %v2150_v13 = vpop.eup %2149 }
 0x934   :  { %v2152_v14 = vpop.eup %2151  ;;  %704 = vrot.lane.b32.xlu1 %v2150_v13, %s2367_s13 }
 0x935   :  { %706 = vrot.lane.b32.xlu0 %v2152_v14, %s2367_s13  ;;  %v2154_v18 = vpop.eup %2153 }
 0x936   :  { %v2156_v19 = vpop.eup %2155  ;;  %v686_v20 = vadd.f32 1.0, %v2154_v18 }
 0x937   :  { %v687_v21 = vadd.f32 1.0, %v2156_v19 }
 0x938   :  { %2157 = vrcp.f32 %v686_v20 }
 0x939   :  { %2159 = vrcp.f32 %v687_v21 }
 0x945   :  { %v2158_v22 = vpop.eup %2157 }
 0x946   :  { %v2160_v24 = vpop.eup %2159  ;;  %v700_v30 = vmul.f32 %v2158_v22, %v696_v28 }
 0x947   :  { %v701_v31 = vmul.f32 %v2160_v24, %v697_v29 }
 0x9a6   :  { %v705_v23 = vpop.permute.xlu1 %704 }
 0x9a7   :  { %v707_v25 = vpop.permute.xlu0 %706  ;;  %v710_v26 = vmul.f32 %v2158_v22, %v705_v23 }
 0x9a8   :  { %v711_v27 = vmul.f32 %v2160_v24, %v707_v25 }
 0x9a9   :  { %714 = vrot.lane.b32.xlu1 %v710_v26, %s2368_s3 }
 0x9aa   :  { %716 = vrot.lane.b32.xlu0 %v711_v27, %s2368_s3 }
 0xa1b   :  { %v715_v32 = vpop.permute.xlu1 %714 }
 0xa1c   :  { %v717_v33 = vpop.permute.xlu0 %716  ;;  %v720_v34 = vadd.f32 %v715_v32, %v700_v30 }
 0xa1d   :  { %v721_v35 = vadd.f32 %v717_v33, %v701_v31 }
 0xa1e   :  { %2161 = vtanh.f32 %v720_v34  ;;  %v836_v5 = vrot.slane %v720_v34, 7 }
 0xa1f   :  { %2163 = vtanh.f32 %v721_v35  ;;  %v837_v6 = vrot.slane %v721_v35, 7 }
 0xa2b   :  { %v2162_v36 = vpop.eup %2161 }
 0xa2c   :  { %v2164_v37 = vpop.eup %2163  ;;  %726 = vrot.lane.b32.xlu1 %v2162_v36, %s2367_s13 }
 0xa2d   :  { %728 = vrot.lane.b32.xlu0 %v2164_v37, %s2367_s13 }
 0xa9e   :  { %v727_v38 = vpop.permute.xlu1 %726 }
 0xa9f   :  { %v729_v39 = vpop.permute.xlu0 %728  ;;  %v732_v40 = vmul.f32 %v2158_v22, %v727_v38 }
 0xaa0   :  { %v733_v41 = vmul.f32 %v2160_v24, %v729_v39 }
 0xaa1   :  { %v736_v42 = vrot.slane %v732_v40, 3 }
 0xaa2   :  { %v737_v43 = vrot.slane %v733_v41, 2 }
 0xaa4   :  { %v738_v44 = vsel %vm319_vm2, %v737_v43, %v736_v42 }
 0xaa5   :  { %739 = vrot.lane.b32.xlu1 %v738_v44, %s2368_s3 }
 0xb17   :  { %v740_v45 = vpop.permute.xlu1 %739 }
 0xb18   :  { %2036 = vmatmul.mubr.msk.f32.vlgmr.msra.gmra.mxu1 %vm188_vm3, %v740_v45 }
 0xb19   :  { %2050 = vmatpush3.msra.mxu1 %v2460_v2  ;;  %2057 = vmatprep.mubr.msk.f32.mxu1 %vm2366_vm0, %v2365_v0 }
 0xb1a   :  { %2051 = vmatprep.subr.mxu1 %v2365_v0 }
 0xb1b   :  { %2052 = vmatpush3.msra.mxu1 %v2463_v4 }
 0xb1c   :  { %2053 = vmatprep.subr.mxu1 %v2365_v0 }
 0xb1d   :  { %2054 = vmatpush3.msra.mxu1 %v2467_v7 }
 0xb1e   :  { %2055 = vmatprep.subr.mxu1 %v2365_v0 }
 0xb1f   :  { %2056 = vmatpush3.msra.mxu1 %v2470_v8 }
 0xb20   :  { %2071 = vmatprep.subr.mxu1 %v2365_v0 }
 0xbd8   :  { %v809_v46 = vpop.f32.mrf.mxu1 }
 0xbd9   :  { %v814_v47 = vrot.slane %v809_v46, 4  ;;  %v815_v48 = vrot.slane %v809_v46, 5 }
 0xbda   :  { %v2037_v49 = vpop.f32.mrf.mxu1 }
 0xbdb   :  { %v818_v50 = vadd.f32 %v814_v47, %v2503_v15  ;;  %v819_v51 = vadd.f32 %v815_v48, %v2501_v11 }
 0xbdd   :  { %2165 = vtanh.f32 %v818_v50  ;;  %v1912_v54 = vmul.f32 -1.442695, %v818_v50  ;;  %v1913_v55 = vmul.f32 -1.442695, %v819_v51 }
 0xbde   :  { %2167 = vtanh.f32 %v819_v51 }
 0xbdf   :  { %2169 = vpow2.f32 %v1912_v54 }
 0xbe0   :  { %2171 = vpow2.f32 %v1913_v55 }
 0xbea   :  { %v2166_v52 = vpop.eup %2165 }
 0xbeb   :  { %v2168_v53 = vpop.eup %2167  ;;  %844 = vrot.lane.b32.xlu0 %v2166_v52, %s2367_s13 }
 0xbec   :  { %846 = vrot.lane.b32.xlu1 %v2168_v53, %s2367_s13  ;;  %v2170_v56 = vpop.eup %2169 }
 0xbed   :  { %v2172_v57 = vpop.eup %2171  ;;  %v826_v58 = vadd.f32 1.0, %v2170_v56 }
 0xbee   :  { %v827_v59 = vadd.f32 1.0, %v2172_v57 }
 0xbef   :  { %2173 = vrcp.f32 %v826_v58 }
 0xbf0   :  { %2175 = vrcp.f32 %v827_v59 }
 0xbfc   :  { %v2174_v60 = vpop.eup %2173 }
 0xbfd   :  { %v2176_v62 = vpop.eup %2175  ;;  %v840_v9 = vmul.f32 %v2174_v60, %v836_v5 }
 0xbfe   :  { %v841_v10 = vmul.f32 %v2176_v62, %v837_v6 }
 0xc5d   :  { %v845_v61 = vpop.permute.xlu0 %844 }
 0xc5e   :  { %v847_v63 = vpop.permute.xlu1 %846  ;;  %v850_v1 = vmul.f32 %v2174_v60, %v845_v61 }
 0xc5f   :  { %v851_v3 = vmul.f32 %v2176_v62, %v847_v63 }
 0xc60   :  { %854 = vrot.lane.b32.xlu0 %v850_v1, %s2368_s3 }
 0xc61   :  { %856 = vrot.lane.b32.xlu1 %v851_v3, %s2368_s3 }
 0xcd2   :  { %v855_v12 = vpop.permute.xlu0 %854 }
 0xcd3   :  { %v857_v13 = vpop.permute.xlu1 %856  ;;  %v860_v14 = vadd.f32 %v855_v12, %v840_v9 }
 0xcd4   :  { %v861_v16 = vadd.f32 %v857_v13, %v841_v10 }
 0xcd5   :  { %2177 = vtanh.f32 %v860_v14  ;;  %v976_v43 = vrot.slane %v860_v14, 7 }
 0xcd6   :  { %2179 = vtanh.f32 %v861_v16  ;;  %v977_v44 = vrot.slane %v861_v16, 7 }
 0xce2   :  { %v2178_v17 = vpop.eup %2177 }
 0xce3   :  { %v2180_v18 = vpop.eup %2179  ;;  %866 = vrot.lane.b32.xlu0 %v2178_v17, %s2367_s13 }
 0xce4   :  { %868 = vrot.lane.b32.xlu1 %v2180_v18, %s2367_s13 }
 0xd55   :  { %v867_v19 = vpop.permute.xlu0 %866 }
 0xd56   :  { %v869_v20 = vpop.permute.xlu1 %868  ;;  %v872_v21 = vmul.f32 %v2174_v60, %v867_v19 }
 0xd57   :  { %v873_v22 = vmul.f32 %v2176_v62, %v869_v20 }
 0xd58   :  { %v876_v23 = vrot.slane %v872_v21, 4 }
 0xd59   :  { %v877_v24 = vrot.slane %v873_v22, 3 }
 0xd5b   :  { %v878_v25 = vsel %vm319_vm2, %v877_v24, %v876_v23 }
 0xd5c   :  { %879 = vrot.lane.b32.xlu0 %v878_v25, %s2368_s3 }
 0xdce   :  { %v880_v26 = vpop.permute.xlu0 %879 }
 0xdcf   :  { %2047 = vmatmul.mubr.msk.f32.vlgmr.msra.gmra.mxu0 %vm188_vm3, %v880_v26 }
 0xdd0   :  { %2061 = vmatpush3.msra.mxu0 %v2460_v2  ;;  %2068 = vmatprep.mubr.msk.f32.mxu0 %vm2366_vm0, %v2365_v0 }
 0xdd1   :  { %2062 = vmatprep.subr.mxu0 %v2365_v0 }
 0xdd2   :  { %2063 = vmatpush3.msra.mxu0 %v2463_v4 }
 0xdd3   :  { %2064 = vmatprep.subr.mxu0 %v2365_v0 }
 0xdd4   :  { %2065 = vmatpush3.msra.mxu0 %v2467_v7 }
 0xdd5   :  { %2066 = vmatprep.subr.mxu0 %v2365_v0 }
 0xdd6   :  { %2067 = vmatpush3.msra.mxu0 %v2470_v8 }
 0xe8f   :  { %v949_v27 = vpop.f32.mrf.mxu0 }
 0xe90   :  { %v954_v28 = vrot.slane %v949_v27, 3  ;;  %v955_v29 = vrot.slane %v949_v27, 4 }
 0xe91   :  { %v2048_v30 = vpop.f32.mrf.mxu0 }
 0xe92   :  { %v958_v2 = vadd.f32 %v954_v28, %v2503_v15  ;;  %v959_v31 = vadd.f32 %v955_v29, %v2501_v11 }
 0xe94   :  { %2181 = vtanh.f32 %v958_v2  ;;  %v1915_v7 = vmul.f32 -1.442695, %v958_v2  ;;  %v1916_v33 = vmul.f32 -1.442695, %v959_v31 }
 0xe95   :  { %2183 = vtanh.f32 %v959_v31 }
 0xe96   :  { %2185 = vpow2.f32 %v1915_v7 }
 0xe97   :  { %2187 = vpow2.f32 %v1916_v33 }
 0xea1   :  { %v2182_v32 = vpop.eup %2181 }
 0xea2   :  { %v2184_v4 = vpop.eup %2183  ;;  %984 = vrot.lane.b32.xlu1 %v2182_v32, %s2367_s13 }
 0xea3   :  { %986 = vrot.lane.b32.xlu0 %v2184_v4, %s2367_s13  ;;  %v2186_v8 = vpop.eup %2185 }
 0xea4   :  { %v2188_v34 = vpop.eup %2187  ;;  %v966_v35 = vadd.f32 1.0, %v2186_v8 }
 0xea5   :  { %v967_v36 = vadd.f32 1.0, %v2188_v34 }
 0xea6   :  { %2189 = vrcp.f32 %v966_v35 }
 0xea7   :  { %2191 = vrcp.f32 %v967_v36 }
 0xeb3   :  { %v2190_v37 = vpop.eup %2189 }
 0xeb4   :  { %v2192_v39 = vpop.eup %2191  ;;  %v980_v45 = vmul.f32 %v2190_v37, %v976_v43 }
 0xeb5   :  { %v981_v46 = vmul.f32 %v2192_v39, %v977_v44 }
 0xf14   :  { %v985_v38 = vpop.permute.xlu1 %984 }
 0xf15   :  { %v987_v40 = vpop.permute.xlu0 %986  ;;  %v990_v41 = vmul.f32 %v2190_v37, %v985_v38 }
 0xf16   :  { %v991_v42 = vmul.f32 %v2192_v39, %v987_v40 }
 0xf17   :  { %994 = vrot.lane.b32.xlu1 %v990_v41, %s2368_s3 }
 0xf18   :  { %996 = vrot.lane.b32.xlu0 %v991_v42, %s2368_s3 }
 0xf89   :  { %v995_v47 = vpop.permute.xlu1 %994 }
 0xf8a   :  { %v997_v48 = vpop.permute.xlu0 %996  ;;  %v1000_v49 = vadd.f32 %v995_v47, %v980_v45 }
 0xf8b   :  { %v1001_v50 = vadd.f32 %v997_v48, %v981_v46 }
 0xf8c   :  { %2193 = vtanh.f32 %v1000_v49  ;;  %v1116_v24 = vrot.slane %v1000_v49, 7 }
 0xf8d   :  { %2195 = vtanh.f32 %v1001_v50  ;;  %v1117_v25 = vrot.slane %v1001_v50, 7 }
 0xf99   :  { %v2194_v51 = vpop.eup %2193 }
 0xf9a   :  { %v2196_v52 = vpop.eup %2195  ;;  %1006 = vrot.lane.b32.xlu1 %v2194_v51, %s2367_s13 }
 0xf9b   :  { %1008 = vrot.lane.b32.xlu0 %v2196_v52, %s2367_s13 }
0x100c   :  { %v1007_v53 = vpop.permute.xlu1 %1006 }
0x100d   :  { %v1009_v54 = vpop.permute.xlu0 %1008  ;;  %v1012_v55 = vmul.f32 %v2190_v37, %v1007_v53 }
0x100e   :  { %v1013_v56 = vmul.f32 %v2192_v39, %v1009_v54 }
0x100f   :  { %v1016_v57 = vrot.slane %v1012_v55, 5 }
0x1010   :  { %v1017_v58 = vrot.slane %v1013_v56, 4 }
0x1012   :  { %v1018_v59 = vsel %vm319_vm2, %v1017_v58, %v1016_v57 }
0x1013   :  { %1019 = vrot.lane.b32.xlu1 %v1018_v59, %s2368_s3 }
0x1085   :  { %v1020_v60 = vpop.permute.xlu1 %1019 }
0x1086   :  { %2058 = vmatmul.mubr.msk.f32.vlgmr.msra.gmra.mxu1 %vm188_vm3, %v1020_v60 }
0x1087   :  { %2079 = vmatprep.mubr.msk.f32.mxu1 %vm2366_vm0, %v2365_v0  ;;  %vm1721_vm0 = vcmask 33792  }
0x1146   :  { %v1089_v61 = vpop.f32.mrf.mxu1 }
0x1147   :  { %v1094_v62 = vrot.slane %v1089_v61, 2  ;;  %v1095_v63 = vrot.slane %v1089_v61, 3 }
0x1148   :  { %v2059_v1 = vpop.f32.mrf.mxu1 }
0x1149   :  { %v1098_v3 = vadd.f32 %v1094_v62, %v2503_v15  ;;  %v1099_v5 = vadd.f32 %v1095_v63, %v2501_v11  ;;  %v1297_v1 = vld [vmem:[#allocation8 + $0x18] sm:$0xff] }
0x114a   :  { %2072 = vmatpush3.msra.mxu1 %v1297_v1 }
0x114b   :  { %2197 = vtanh.f32 %v1098_v3  ;;  %v1918_v10 = vmul.f32 -1.442695, %v1098_v3  ;;  %v1919_v12 = vmul.f32 -1.442695, %v1099_v5  ;;  %v1296_v3 = vld [vmem:[#allocation8 + $0x10] sm:$0xff]  ;;  %2073 = vmatprep.subr.mxu1 %v2365_v0 }
0x114c   :  { %2199 = vtanh.f32 %v1099_v5  ;;  %v1295_v5 = vld [vmem:[#allocation8 + $0x8] sm:$0xff]  ;;  %2074 = vmatpush3.msra.mxu1 %v1296_v3 }
0x114d   :  { %2201 = vpow2.f32 %v1918_v10  ;;  %2075 = vmatprep.subr.mxu1 %v2365_v0 }
0x114e   :  { %2203 = vpow2.f32 %v1919_v12  ;;  %2076 = vmatpush3.msra.mxu1 %v1295_v5 }
0x114f   :  { %2077 = vmatprep.subr.mxu1 %v2365_v0  ;;  %v1395_v0 = vlaneseq }
0x1158   :  { %v2198_v6 = vpop.eup %2197 }
0x1159   :  { %v2200_v9 = vpop.eup %2199  ;;  %1124 = vrot.lane.b32.xlu0 %v2198_v6, %s2367_s13  ;;  %v1294_v6 = vld [vmem:[#allocation8] sm:$0xff] }
0x115a   :  { %1126 = vrot.lane.b32.xlu1 %v2200_v9, %s2367_s13  ;;  %v2202_v13 = vpop.eup %2201  ;;  %2078 = vmatpush3.msra.mxu1 %v1294_v6 }
0x115b   :  { %v2204_v14 = vpop.eup %2203  ;;  %v1106_v16 = vadd.f32 1.0, %v2202_v13 }
0x115c   :  { %v1107_v17 = vadd.f32 1.0, %v2204_v14 }
0x115d   :  { %2205 = vrcp.f32 %v1106_v16 }
0x115e   :  { %2207 = vrcp.f32 %v1107_v17 }
0x116a   :  { %v2206_v18 = vpop.eup %2205 }
0x116b   :  { %v2208_v20 = vpop.eup %2207  ;;  %v1120_v26 = vmul.f32 %v2206_v18, %v1116_v24 }
0x116c   :  { %v1121_v27 = vmul.f32 %v2208_v20, %v1117_v25  ;;  %v1923_v25 = vld [vmem:[%s2857_s5] ss:$0 sm:$0xff]  ;;  %s2370_s5 = smov 123  }
0x11cb   :  { %v1125_v19 = vpop.permute.xlu0 %1124 }
0x11cc   :  { %v1127_v21 = vpop.permute.xlu1 %1126  ;;  %v1130_v22 = vmul.f32 %v2206_v18, %v1125_v19 }
0x11cd   :  { %v1131_v23 = vmul.f32 %v2208_v20, %v1127_v21  ;;  %v2369_v21 = vmov 1966171168  }
0x11ce   :  { %1134 = vrot.lane.b32.xlu0 %v1130_v22, %s2368_s3  ;;  %v1413_v22 = vunpack.c.l.s4 %v2369_v21 }
0x11cf   :  { %1136 = vrot.lane.b32.xlu1 %v1131_v23, %s2368_s3  ;;  %v2648_v23 = vshrl.u32 %v1395_v0, 7 }
0x11d0   :  { %v1414_v24 = vunpack.c.0.s8 %v1413_v22 }
0x1240   :  { %v1135_v28 = vpop.permute.xlu0 %1134 }
0x1241   :  { %v1137_v29 = vpop.permute.xlu1 %1136  ;;  %v1140_v30 = vadd.f32 %v1135_v28, %v1120_v26  ;;  %v1417_v26 = vsub.s32 %v1414_v24, %v2648_v23  ;;  %v1925_v28 = vld [vmem:[%s2859_s7] ss:$0 sm:$0xff] }
0x1242   :  { %v1141_v2 = vadd.f32 %v1137_v29, %v1121_v27 }
0x1243   :  { %2209 = vtanh.f32 %v1140_v30  ;;  %v1256_v56 = vrot.slane %v1140_v30, 7  ;;  %v1404_v30 = vsub.s32 1, %v2648_v23 }
0x1244   :  { %2211 = vtanh.f32 %v1141_v2  ;;  %v1257_v57 = vrot.slane %v1141_v2, 7  ;;  %v1397_v2 = vsub.s32 0, %v2648_v23 }
0x1250   :  { %v2210_v31 = vpop.eup %2209 }
0x1251   :  { %v2212_v32 = vpop.eup %2211  ;;  %1146 = vrot.lane.b32.xlu0 %v2210_v31, %s2367_s13 }
0x1252   :  { %1148 = vrot.lane.b32.xlu1 %v2212_v32, %s2367_s13 }
0x12c3   :  { %v1147_v4 = vpop.permute.xlu0 %1146 }
0x12c4   :  { %v1149_v7 = vpop.permute.xlu1 %1148  ;;  %v1152_v33 = vmul.f32 %v2206_v18, %v1147_v4 }
0x12c5   :  { %v1153_v8 = vmul.f32 %v2208_v20, %v1149_v7 }
0x12c6   :  { %v1156_v34 = vrot.slane %v1152_v33, 6 }
0x12c7   :  { %v1157_v35 = vrot.slane %v1153_v8, 5 }
0x12c9   :  { %v1158_v36 = vsel %vm319_vm2, %v1157_v35, %v1156_v34 }
0x12ca   :  { %1159 = vrot.lane.b32.xlu0 %v1158_v36, %s2368_s3 }
0x133c   :  { %v1160_v37 = vpop.permute.xlu0 %1159 }
0x133d   :  { %2069 = vmatmul.mubr.msk.f32.vlgmr.msra.gmra.mxu0 %vm188_vm3, %v1160_v37 }
0x13fd   :  { %v1229_v38 = vpop.f32.mrf.mxu0 }
0x13fe   :  { %v1234_v39 = vrot.slane %v1229_v38, 1  ;;  %v1235_v40 = vrot.slane %v1229_v38, 2  ;;  %v2668_v38 = vld [vmem:[%s2858_s6] sm:$0x1f]  ;;  %s2371_s6 = smov 118  }
0x13ff   :  { %v2070_v41 = vpop.f32.mrf.mxu0 }
0x1400   :  { %v1238_v42 = vadd.f32 %v1234_v39, %v2503_v15  ;;  %v1239_v43 = vadd.f32 %v1235_v40, %v2501_v11 }
0x1402   :  { %2213 = vtanh.f32 %v1238_v42  ;;  %v1921_v46 = vmul.f32 -1.442695, %v1238_v42  ;;  %v1922_v47 = vmul.f32 -1.442695, %v1239_v43 }
0x1403   :  { %2215 = vtanh.f32 %v1239_v43 }
0x1404   :  { %2217 = vpow2.f32 %v1921_v46 }
0x1405   :  { %2219 = vpow2.f32 %v1922_v47 }
0x140f   :  { %v2214_v44 = vpop.eup %2213 }
0x1410   :  { %v2216_v45 = vpop.eup %2215  ;;  %1264 = vrot.lane.b32.xlu1 %v2214_v44, %s2367_s13 }
0x1411   :  { %1266 = vrot.lane.b32.xlu0 %v2216_v45, %s2367_s13  ;;  %v2218_v48 = vpop.eup %2217 }
0x1412   :  { %v2220_v49 = vpop.eup %2219  ;;  %v1246_v50 = vadd.f32 1.0, %v2218_v48 }
0x1413   :  { %v1247_v51 = vadd.f32 1.0, %v2220_v49 }
0x1414   :  { %2221 = vrcp.f32 %v1246_v50 }
0x1415   :  { %2223 = vrcp.f32 %v1247_v51 }
0x1421   :  { %v2222_v15 = vpop.eup %2221 }
0x1422   :  { %v2224_v52 = vpop.eup %2223  ;;  %v1260_v58 = vmul.f32 %v2222_v15, %v1256_v56 }
0x1423   :  { %v1261_v59 = vmul.f32 %v2224_v52, %v1257_v57 }
0x1482   :  { %v1265_v11 = vpop.permute.xlu1 %1264 }
0x1483   :  { %v1267_v53 = vpop.permute.xlu0 %1266  ;;  %v1270_v54 = vmul.f32 %v2222_v15, %v1265_v11 }
0x1484   :  { %v1271_v55 = vmul.f32 %v2224_v52, %v1267_v53 }
0x1485   :  { %1274 = vrot.lane.b32.xlu1 %v1270_v54, %s2368_s3 }
0x1486   :  { %1276 = vrot.lane.b32.xlu0 %v1271_v55, %s2368_s3 }
0x14f7   :  { %v1275_v60 = vpop.permute.xlu1 %1274 }
0x14f8   :  { %v1277_v61 = vpop.permute.xlu0 %1276  ;;  %v1280_v62 = vadd.f32 %v1275_v60, %v1260_v58 }
0x14f9   :  { %v1281_v63 = vadd.f32 %v1277_v61, %v1261_v59 }
0x14fa   :  { %2225 = vtanh.f32 %v1280_v62 }
0x14fb   :  { %2227 = vtanh.f32 %v1281_v63 }
0x1507   :  { %v2226_v9 = vpop.eup %2225 }
0x1508   :  { %v2228_v10 = vpop.eup %2227  ;;  %1286 = vrot.lane.b32.xlu1 %v2226_v9, %s2367_s13 }
0x1509   :  { %1288 = vrot.lane.b32.xlu0 %v2228_v10, %s2367_s13 }
0x157a   :  { %v1287_v12 = vpop.permute.xlu1 %1286 }
0x157b   :  { %v1289_v13 = vpop.permute.xlu0 %1288  ;;  %v1292_v14 = vmul.f32 %v2222_v15, %v1287_v12 }
0x157c   :  { %v1293_v16 = vmul.f32 %v2224_v52, %v1289_v13 }
0x157d   :  { %v1307_v17 = vrot.slane %v1292_v14, 7 }
0x157e   :  { %v1308_v18 = vrot.slane %v1293_v16, 6 }
0x1580   :  { %v1309_v19 = vsel %vm319_vm2, %v1308_v18, %v1307_v17 }
0x1581   :  { %1310 = vrot.lane.b32.xlu1 %v1309_v19, %s2368_s3 }
0x15f3   :  { %v1311_v20 = vpop.permute.xlu1 %1310 }
0x15f4   :  { %2080 = vmatmul.mubr.msk.f32.vlgmr.msra.gmra.mxu1 %vm188_vm3, %v1311_v20 }
0x16b4   :  { %v1380_v27 = vpop.f32.mrf.mxu1 }
0x16b5   :  { %v1381_v29 = vadd.f32 %v1923_v25, %v1380_v27 }
0x16b6   :  { %v2081_v31 = vpop.f32.mrf.mxu1 }
0x16b7   :  { %v1418_v32 = vrot.slane %v1381_v29, %v1417_v26  ;;  %v1394_v4 = vadd.f32 %v1925_v28, %v1381_v29  ;;  %1385 = vst.msk [vmem:[#allocation10] sm:$0x3] %vm1384_vm4, %v1381_v29 }
0x16b9   :  { %v1419_v7 = vcombine.high %v1418_v32, %v1418_v32  ;;  %v1426_v33 = vrot.slane %v1418_v32, %v1417_v26  ;;  %v1405_v8 = vrot.slane %v1394_v4, %v1404_v30  ;;  %v1398_v34 = vrot.slane %v1394_v4, %v1397_v2 }
0x16bb   :  { %v1433_v35 = vrot.slane %v1419_v7, %v1417_v26  ;;  %1407 = vbcast.lane.b32.xlu0 %v1405_v8, 256  ;;  %1400 = vbcast.lane.b32.xlu1 %v1398_v34, 256  ;;  %v2659_v36 = vrot.slane %v1426_v33, %v1397_v2 }
0x16bd   :  { %v2661_v37 = vrot.slane %v1433_v35, %v1397_v2 }
0x16bf   :  { %1444 = vrot.lane.b32.xlu0 %v2661_v37, %s2370_s5  ;;  %1442 = vrot.lane.b32.xlu1 %v2659_v36, %s2370_s5 }
0x172d   :  { %v1408_v39 = vpop.permute.xlu0 %1407  ;;  %v1401_v40 = vpop.permute.xlu1 %1400 }
0x172e   :  { %v1410_v41 = vadd.f32 %v1408_v39, %v2668_v38  ;;  %v1409_v42 = vadd.f32 %v1401_v40, %v2668_v38 }
0x1731   :  { %v1445_v43 = vpop.permute.xlu0 %1444  ;;  %v1443_v44 = vpop.permute.xlu1 %1442 }
0x1732   :  { %v2672_v45 = vadd.f32 %v1445_v43, %v1410_v41  ;;  %v2674_v46 = vadd.f32 %v1443_v44, %v1409_v42 }
0x1734   :  { %v1458_v47 = vsel %vm1450_vm5, %v2672_v45, -inf  ;;  %v1451_v48 = vsel %vm1450_vm5, %v2674_v46, -inf }
0x1735   :  { %v1459_v49 = vrot.slane %v1458_v47, 4  ;;  %v1452_v50 = vrot.slane %v1451_v48, 4 }
0x1737   :  { %v1460_v51 = vmax.f32 %v1458_v47, %v1459_v49  ;;  %v1453_v15 = vmax.f32 %v1451_v48, %v1452_v50 }
0x1739   :  { %v1461_v11 = vrot.slane %v1460_v51, 2  ;;  %v1454_v52 = vrot.slane %v1453_v15, 2 }
0x173b   :  { %v1462_v53 = vmax.f32 %v1460_v51, %v1461_v11  ;;  %v1455_v54 = vmax.f32 %v1453_v15, %v1454_v52 }
0x173d   :  { %v1463_v55 = vrot.slane %v1462_v53, 1  ;;  %v1456_v56 = vrot.slane %v1455_v54, 1 }
0x173f   :  { %v2680_v57 = vmax.f32 %v1462_v53, %v1463_v55  ;;  %v2682_v58 = vmax.f32 %v1455_v54, %v1456_v56 }
0x1741   :  { %1495 = vbcast.lane.b32.xlu0 %v2680_v57, 256  ;;  %vm1468_vm6 = vcmp.eq.f32.partialorder %v2672_v45, %v2680_v57  ;;  %1492 = vbcast.lane.b32.xlu1 %v2682_v58, 256 }
0x1745   :  { %1501 = vrot.lane.b32.xlu0 %v2661_v37, %s2371_s6  ;;  %1499 = vrot.lane.b32.xlu1 %v2659_v36, %s2371_s6 }
0x17b3   :  { %v1496_v59 = vpop.permute.xlu0 %1495  ;;  %v1493_v60 = vpop.permute.xlu1 %1492 }
0x17b4   :  { %v1498_v61 = vadd.f32 %v1496_v59, %v2668_v38  ;;  %v1497_v62 = vadd.f32 %v1493_v60, %v2668_v38 }
0x17b7   :  { %v1502_v63 = vpop.permute.xlu0 %1501  ;;  %v1500_v1 = vpop.permute.xlu1 %1499 }
0x17b8   :  { %v2694_v3 = vadd.f32 %v1502_v63, %v1498_v61  ;;  %v2696_v5 = vadd.f32 %v1500_v1, %v1497_v62 }
0x17ba   :  { %v1514_v6 = vsel %vm1450_vm5, %v2694_v3, -inf  ;;  %v1507_v9 = vsel %vm1450_vm5, %v2696_v5, -inf }
0x17bb   :  { %v1515_v10 = vrot.slane %v1514_v6, 4  ;;  %v1508_v12 = vrot.slane %v1507_v9, 4 }
0x17bd   :  { %v1516_v13 = vmax.f32 %v1514_v6, %v1515_v10  ;;  %v1509_v14 = vmax.f32 %v1507_v9, %v1508_v12 }
0x17bf   :  { %v1517_v16 = vrot.slane %v1516_v13, 2  ;;  %v1510_v17 = vrot.slane %v1509_v14, 2 }
0x17c1   :  { %v1518_v18 = vmax.f32 %v1516_v13, %v1517_v16  ;;  %v1511_v19 = vmax.f32 %v1509_v14, %v1510_v17 }
0x17c3   :  { %v1519_v20 = vrot.slane %v1518_v18, 1  ;;  %v1512_v21 = vrot.slane %v1511_v19, 1 }
0x17c5   :  { %v2702_v22 = vmax.f32 %v1518_v18, %v1519_v20  ;;  %v2704_v24 = vmax.f32 %v1511_v19, %v1512_v21 }
0x17c7   :  { %1549 = vbcast.lane.b32.xlu0 %v2702_v22, 256  ;;  %vm1522_vm8 = vcmp.eq.f32.partialorder %v2694_v3, %v2702_v22  ;;  %1546 = vbcast.lane.b32.xlu1 %v2704_v24, 256  ;;  %vm1521_vm9 = vcmp.eq.f32.partialorder %v2696_v5, %v2704_v24 }
0x17cb   :  { %1555 = vrot.lane.b32.xlu0 %v2661_v37, %s2372_s19  ;;  %1553 = vrot.lane.b32.xlu1 %v2659_v36, %s2372_s19 }
0x1839   :  { %v1550_v25 = vpop.permute.xlu0 %1549  ;;  %v1547_v26 = vpop.permute.xlu1 %1546 }
0x183a   :  { %v1552_v27 = vadd.f32 %v1550_v25, %v2668_v38  ;;  %v1551_v28 = vadd.f32 %v1547_v26, %v2668_v38 }
0x183d   :  { %v1556_v29 = vpop.permute.xlu0 %1555  ;;  %v1554_v30 = vpop.permute.xlu1 %1553 }
0x183e   :  { %v2716_v2 = vadd.f32 %v1556_v29, %v1552_v27  ;;  %v2718_v31 = vadd.f32 %v1554_v30, %v1551_v28 }
0x1840   :  { %v1568_v32 = vsel %vm1450_vm5, %v2716_v2, -inf  ;;  %v1561_v4 = vsel %vm1450_vm5, %v2718_v31, -inf }
0x1841   :  { %v1569_v7 = vrot.slane %v1568_v32, 4  ;;  %v1562_v33 = vrot.slane %v1561_v4, 4 }
0x1843   :  { %v1570_v8 = vmax.f32 %v1568_v32, %v1569_v7  ;;  %v1563_v34 = vmax.f32 %v1561_v4, %v1562_v33 }
0x1845   :  { %v1571_v35 = vrot.slane %v1570_v8, 2  ;;  %v1564_v39 = vrot.slane %v1563_v34, 2 }
0x1847   :  { %v1572_v40 = vmax.f32 %v1570_v8, %v1571_v35  ;;  %v1565_v41 = vmax.f32 %v1563_v34, %v1564_v39 }
0x1849   :  { %v1573_v42 = vrot.slane %v1572_v40, 1  ;;  %v1566_v43 = vrot.slane %v1565_v41, 1 }
0x184b   :  { %v2724_v44 = vmax.f32 %v1572_v40, %v1573_v42  ;;  %v2726_v47 = vmax.f32 %v1565_v41, %v1566_v43 }
0x184d   :  { %1603 = vbcast.lane.b32.xlu0 %v2724_v44, 256  ;;  %vm1576_vm10 = vcmp.eq.f32.partialorder %v2716_v2, %v2724_v44  ;;  %1600 = vbcast.lane.b32.xlu1 %v2726_v47, 256  ;;  %vm1575_vm11 = vcmp.eq.f32.partialorder %v2718_v31, %v2726_v47 }
0x1851   :  { %1609 = vrot.lane.b32.xlu0 %v2661_v37, %s2373_s20  ;;  %1607 = vrot.lane.b32.xlu1 %v2659_v36, %s2373_s20 }
0x18bf   :  { %v1604_v48 = vpop.permute.xlu0 %1603  ;;  %v1601_v49 = vpop.permute.xlu1 %1600 }
0x18c0   :  { %v1606_v50 = vadd.f32 %v1604_v48, %v2668_v38  ;;  %v1605_v51 = vadd.f32 %v1601_v49, %v2668_v38 }
0x18c3   :  { %v1610_v15 = vpop.permute.xlu0 %1609  ;;  %v1608_v11 = vpop.permute.xlu1 %1607 }
0x18c4   :  { %v2738_v52 = vadd.f32 %v1610_v15, %v1606_v50  ;;  %v2740_v53 = vadd.f32 %v1608_v11, %v1605_v51  ;;  %v2768_v50 = vand.u32 127, %v1395_v0 }
0x18c6   :  { %v1622_v54 = vsel %vm1450_vm5, %v2738_v52, -inf  ;;  %v1615_v55 = vsel %vm1450_vm5, %v2740_v53, -inf }
0x18c7   :  { %v1623_v56 = vrot.slane %v1622_v54, 4  ;;  %v1616_v59 = vrot.slane %v1615_v55, 4 }
0x18c9   :  { %v1624_v60 = vmax.f32 %v1622_v54, %v1623_v56  ;;  %v1617_v61 = vmax.f32 %v1615_v55, %v1616_v59 }
0x18cb   :  { %v1625_v62 = vrot.slane %v1624_v60, 2  ;;  %v1618_v63 = vrot.slane %v1617_v61, 2 }
0x18cd   :  { %v1626_v1 = vmax.f32 %v1624_v60, %v1625_v62  ;;  %v1619_v6 = vmax.f32 %v1617_v61, %v1618_v63 }
0x18cf   :  { %v1627_v9 = vrot.slane %v1626_v1, 1  ;;  %v1620_v10 = vrot.slane %v1619_v6, 1 }
0x18d1   :  { %v2746_v12 = vmax.f32 %v1626_v1, %v1627_v9  ;;  %v2748_v13 = vmax.f32 %v1619_v6, %v1620_v10 }
0x18d3   :  { %1657 = vbcast.lane.b32.xlu0 %v2746_v12, 256  ;;  %vm1630_vm12 = vcmp.eq.f32.partialorder %v2738_v52, %v2746_v12  ;;  %1654 = vbcast.lane.b32.xlu1 %v2748_v13, 256  ;;  %vm1629_vm13 = vcmp.eq.f32.partialorder %v2740_v53, %v2748_v13 }
0x18d7   :  { %1663 = vrot.lane.b32.xlu0 %v2661_v37, %s2374_s21  ;;  %1661 = vrot.lane.b32.xlu1 %v2659_v36, %s2374_s21 }
0x1945   :  { %v1658_v14 = vpop.permute.xlu0 %1657  ;;  %v1655_v16 = vpop.permute.xlu1 %1654 }
0x1946   :  { %v1660_v17 = vadd.f32 %v1658_v14, %v2668_v38  ;;  %v1659_v18 = vadd.f32 %v1655_v16, %v2668_v38  ;;  %v1926_v38 = vld [vmem:[%s2860_s8] ss:$0 sm:$0xff]  ;;  %s2376_s8 = smov [#allocation10]  }
0x1947   :  { %s1872_s24 = sshll.u32 %s2376_s8, 4  ;;  %s1873_s24 = int_to_ptr.vmem [resolvable:$true] %s1872_s24 }
0x1948   :  { %s2309_s25 = scalar_lea.vmem %s1873_s24, 32  ;;  %p2314_p7 = scmp.lt.s32.totalorder %s1873_s24, %s1873_s24 }
0x1949   :  { %v1664_v19 = vpop.permute.xlu0 %1663  ;;  %v1662_v20 = vpop.permute.xlu1 %1661  ;;  %p2310_p6 = scmp.ne.s32.totalorder %s1873_s24, %s2309_s25  ;;  %p2315_p8 = scmp.lt.s32.totalorder %s2309_s25, %s2309_s25 }
0x194a   :  { %v1668_v21 = vadd.f32 %v1664_v19, %v1660_v17  ;;  %v1667_v25 = vadd.f32 %v1662_v20, %v1659_v18 }
0x194b   :  { %p2316_p9 = por %p2315_p8, %p2314_p7 }
0x194c   :  { %v1676_v26 = vsel %vm1450_vm5, %v1668_v21, -inf  ;;  %v1669_v27 = vsel %vm1450_vm5, %v1667_v25, -inf }
0x194d   :  { %v1677_v28 = vrot.slane %v1676_v26, 4  ;;  %v1670_v29 = vrot.slane %v1669_v27, 4  ;;  %p2317_p10 = pnand %p2316_p9, %p2310_p6 }
0x194f   :  { %v1678_v30 = vmax.f32 %v1676_v26, %v1677_v28  ;;  %v1671_v37 = vmax.f32 %v1669_v27, %v1670_v29 }
0x1951   :  { %v1679_v32 = vrot.slane %v1678_v30, 2  ;;  %v1672_v36 = vrot.slane %v1671_v37, 2 }
0x1953   :  { %v1680_v4 = vmax.f32 %v1678_v30, %v1679_v32  ;;  %v1673_v7 = vmax.f32 %v1671_v37, %v1672_v36  ;;  %v2375_v32 = vmov 0  }
0x1955   :  { %v1681_v33 = vrot.slane %v1680_v4, 1  ;;  %v1674_v8 = vrot.slane %v1673_v7, 1 }
0x1957   :  { %v1682_v34 = vmax.f32 %v1680_v4, %v1681_v33  ;;  %v1675_v35 = vmax.f32 %v1673_v7, %v1674_v8 }
0x1959   :  { %vm1684_vm14 = vcmp.eq.f32.partialorder %v1668_v21, %v1682_v34  ;;  %v1715_v39 = vadd.f32 %v1926_v38, %v1682_v34  ;;  %vm1683_vm15 = vcmp.eq.f32.partialorder %v1667_v25, %v1675_v35  ;;  %v1714_v40 = vadd.f32 %v1926_v38, %v1675_v35 }
0x195a   :  { %v1686_v63 = vsel %vm1684_vm14, %v2648_v23, 5  ;;  %v1685_v1 = vsel %vm1683_vm15, %v2648_v23, 5 }
0x195b   :  { %v1718_v41 = vrot.slane %v1715_v39, 7  ;;  %v1697_v6 = vsel %vm1450_vm5, %v1686_v63, 2147483647  ;;  %v1687_v9 = vsel %vm1450_vm5, %v1685_v1, 2147483647 }
0x195c   :  { %v1698_v10 = vrot.slane %v1697_v6, 4  ;;  %v1688_v14 = vrot.slane %v1687_v9, 4 }
0x195d   :  { %v1719_v42 = vsel %vm319_vm2, %v1718_v41, %v1714_v40 }
0x195e   :  { %v1722_v43 = vsel %vm1721_vm0, %v1719_v42, -inf }
0x195f   :  { %1723 = vmax.xlane.f32.xlu0 %v1722_v43 }
0x19e8   :  { %v1724_v48 = vpop.xlane.xlu0 %1723 }
0x19e9   :  { %v1728_v49 = vrot.slane %v1724_v48, 1  ;;  %vm1731_vm1 = vcmp.eq.f32.partialorder %v1714_v40, %v1724_v48  ;;  %v1632_v48 = vsel %vm1630_vm12, %v2648_v23, 5  ;;  %vm1752_vm12 = vcmp.eq.s32.totalorder %v2768_v50, 5 }
0x19ea   :  { %v1733_v11 = vsel %vm1731_vm1, %v2768_v50, 5  ;;  %vm1699_vm1 = vcmp.lt.s32.totalorder %v1697_v6, %v1698_v10 }
0x19eb   :  { %vm1732_vm3 = vcmp.eq.f32.partialorder %v1715_v39, %v1728_v49  ;;  %v1700_v16 = vsel %vm1699_vm1, %v1697_v6, %v1698_v10  ;;  %v1631_v49 = vsel %vm1629_vm13, %v2648_v23, 5  ;;  %vm1774_vm13 = vcmp.eq.s32.totalorder %v2768_v50, 4 }
0x19ec   :  { %v1734_v51 = vsel %vm1732_vm3, %v2768_v50, 5  ;;  %vm1689_vm3 = vcmp.lt.s32.totalorder %v1687_v9, %v1688_v14  ;;  %v1701_v18 = vrot.slane %v1700_v16, 2 }
0x19ed   :  { %v1735_v15 = vrot.slane %v1734_v51, 7  ;;  %v1690_v17 = vsel %vm1689_vm3, %v1687_v9, %v1688_v14  ;;  %v1643_v51 = vsel %vm1450_vm5, %v1632_v48, 2147483647 }
0x19ee   :  { %v1691_v19 = vrot.slane %v1690_v17, 2 }
0x19ef   :  { %v1736_v54 = vsel %vm319_vm2, %v1735_v15, %v1733_v11  ;;  %v1633_v15 = vsel %vm1450_vm5, %v1631_v49, 2147483647  ;;  %v1644_v11 = vrot.slane %v1643_v51, 4 }
0x19f0   :  { %v1737_v55 = vsel %vm1721_vm0, %v1736_v54, 2147483647  ;;  %vm1692_vm7 = vcmp.lt.s32.totalorder %v1690_v17, %v1691_v19  ;;  %v1634_v54 = vrot.slane %v1633_v15, 4 }
0x19f1   :  { %v1739_v56 = vshra.s32 %v1737_v55, 16  ;;  %v1738_v60 = vand.u32 65535, %v1737_v55  ;;  %v1693_v26 = vsel %vm1692_vm7, %v1690_v17, %v1691_v19  ;;  %vm1645_vm7 = vcmp.lt.s32.totalorder %v1643_v51, %v1644_v11 }
0x19f2   :  { %v1694_v30 = vrot.slane %v1693_v26, 1  ;;  %vm1635_vm3 = vcmp.lt.s32.totalorder %v1633_v15, %v1634_v54  ;;  %v1646_v55 = vsel %vm1645_vm7, %v1643_v51, %v1644_v11 }
0x19f3   :  { %v1741_v59 = vcvt.s32.f32 %v1739_v56  ;;  %v1740_v62 = vcvt.s32.f32 %v1738_v60  ;;  %v1636_v56 = vsel %vm1635_vm3, %v1633_v15, %v1634_v54 }
0x19f4   :  { %vm1695_vm1 = vcmp.lt.s32.totalorder %v1693_v26, %v1694_v30  ;;  %v1637_v60 = vrot.slane %v1636_v56, 2 }
0x19f5   :  { %1742 = vmin.xlane.f32.xlu1 %v1741_v59  ;;  %v1696_v8 = vsel %vm1695_vm1, %v1693_v26, %v1694_v30 }
0x1a7e   :  { %v1743_v61 = vpop.xlane.xlu1 %1742 }
0x1a7f   :  { %vm1744_vm4 = vcmp.eq.f32.partialorder %v1741_v59, %v1743_v61  ;;  %v1749_v20 = vcvt.f32.s32 %v1743_v61  ;;  %v1647_v59 = vrot.slane %v1646_v55, 2 }
0x1a80   :  { %v1745_v0 = vsel %vm1744_vm4, %v1740_v62, inf  ;;  %vm1702_vm4 = vcmp.lt.s32.totalorder %v1700_v16, %v1701_v18 }
0x1a81   :  { %1746 = vmin.xlane.f32.xlu0 %v1745_v0  ;;  %v1703_v21 = vsel %vm1702_vm4, %v1700_v16, %v1701_v18  ;;  %v1750_v28 = vshll.u32 %v1749_v20, 16  ;;  %vm1648_vm4 = vcmp.lt.s32.totalorder %v1646_v55, %v1647_v59 }
0x1a82   :  { %v1704_v25 = vrot.slane %v1703_v21, 1  ;;  %v1649_v52 = vsel %vm1648_vm4, %v1646_v55, %v1647_v59 }
0x1a83   :  { %v1650_v13 = vrot.slane %v1649_v52, 1 }
0x1a84   :  { %vm1705_vm14 = vcmp.lt.s32.totalorder %v1703_v21, %v1704_v25 }
0x1a85   :  { %v1706_v7 = vsel %vm1705_vm14, %v1703_v21, %v1704_v25  ;;  %vm1638_vm14 = vcmp.lt.s32.totalorder %v1636_v56, %v1637_v60 }
0x1a86   :  { %v1639_v53 = vsel %vm1638_vm14, %v1636_v56, %v1637_v60 }
0x1a87   :  { %v1640_v1 = vrot.slane %v1639_v53, 1 }
0x1a89   :  { %vm1641_vm7 = vcmp.lt.s32.totalorder %v1639_v53, %v1640_v1 }
0x1a8a   :  { %v1642_v19 = vsel %vm1641_vm7, %v1639_v53, %v1640_v1 }
0x1b0a   :  { %v1747_v27 = vpop.xlane.xlu0 %1746 }
0x1b0b   :  { %v1748_v29 = vcvt.f32.s32 %v1747_v27 }
0x1b0d   :  { %v1751_v37 = vadd.s32 %v1750_v28, %v1748_v29 }
0x1b0f   :  { %vm1754_vm15 = vcmp.eq.s32.totalorder %v2768_v50, %v1751_v37  ;;  %v1753_v9 = vsel %vm1752_vm12, %v1751_v37, 0  ;;  %v1578_v37 = vsel %vm1576_vm10, %v2648_v23, 5  ;;  %vm1796_vm10 = vcmp.eq.s32.totalorder %v2768_v50, 3 }
0x1b10   :  { %v1755_v36 = vsel %vm1754_vm15, 1, %v2375_v32  ;;  %vm1651_vm15 = vcmp.lt.s32.totalorder %v1649_v52, %v1650_v13 }
0x1b11   :  { %v1756_v4 = vrot.slane %v1755_v36, 1  ;;  %v1757_v38 = vmul.u32 %v1755_v36, %v1696_v8  ;;  %v1652_v17 = vsel %vm1651_vm15, %v1649_v52, %v1650_v13  ;;  %v1577_v36 = vsel %vm1575_vm11, %v2648_v23, 5 }
0x1b13   :  { %v1758_v33 = vmul.u32 %v1756_v4, %v1706_v7  ;;  %v1589_v4 = vsel %vm1450_vm5, %v1578_v37, 2147483647  ;;  %v1579_v7 = vsel %vm1450_vm5, %v1577_v36, 2147483647 }
0x1b14   :  { %v1580_v8 = vrot.slane %v1579_v7, 4 }
0x1b15   :  { %v1759_v34 = vrot.slane %v1758_v33, 7  ;;  %v1590_v33 = vrot.slane %v1589_v4, 4 }
0x1b16   :  { %vm1581_vm4 = vcmp.lt.s32.totalorder %v1579_v7, %v1580_v8 }
0x1b17   :  { %v1760_v35 = vsel %vm319_vm2, %v1759_v34, %v1757_v38  ;;  %vm1591_vm3 = vcmp.lt.s32.totalorder %v1589_v4, %v1590_v33  ;;  %v1582_v34 = vsel %vm1581_vm4, %v1579_v7, %v1580_v8 }
0x1b18   :  { %v1761_v39 = vsel %vm1721_vm0, %v1760_v35, 0  ;;  %v1592_v38 = vsel %vm1591_vm3, %v1589_v4, %v1590_v33 }
0x1b19   :  { %v1763_v40 = vshrl.u32 %v1761_v39, 16  ;;  %v1762_v41 = vand.u32 65535, %v1761_v39  ;;  %v1593_v35 = vrot.slane %v1592_v38, 2  ;;  %v1583_v39 = vrot.slane %v1582_v34, 2 }
0x1b1b   :  { %v1765_v42 = vcvt.s32.f32 %v1763_v40  ;;  %v1764_v43 = vcvt.s32.f32 %v1762_v41  ;;  %vm1594_vm14 = vcmp.lt.s32.totalorder %v1592_v38, %v1593_v35  ;;  %vm1584_vm12 = vcmp.lt.s32.totalorder %v1582_v34, %v1583_v39 }
0x1b1c   :  { %v1595_v2 = vsel %vm1594_vm14, %v1592_v38, %v1593_v35  ;;  %v1585_v31 = vsel %vm1584_vm12, %v1582_v34, %v1583_v39 }
0x1b1d   :  { %1768 = vadd.xlane.f32.xlu0 %v1765_v42  ;;  %1766 = vadd.xlane.f32.xlu1 %v1764_v43  ;;  %v1596_v47 = vrot.slane %v1595_v2, 1  ;;  %v1586_v48 = vrot.slane %v1585_v31, 1 }
0x1b1f   :  { %vm1597_vm11 = vcmp.lt.s32.totalorder %v1595_v2, %v1596_v47  ;;  %vm1587_vm15 = vcmp.lt.s32.totalorder %v1585_v31, %v1586_v48 }
0x1b20   :  { %v1598_v54 = vsel %vm1597_vm11, %v1595_v2, %v1596_v47  ;;  %v1588_v56 = vsel %vm1587_vm15, %v1585_v31, %v1586_v48 }
0x1ba6   :  { %v1769_v12 = vpop.xlane.xlu0 %1768  ;;  %v1767_v61 = vpop.xlane.xlu1 %1766 }
0x1ba7   :  { %v1771_v62 = vcvt.f32.s32 %v1769_v12  ;;  %v1770_v63 = vcvt.f32.s32 %v1767_v61 }
0x1ba9   :  { %v1772_v0 = vshll.u32 %v1771_v62, 16 }
0x1bab   :  { %v1773_v6 = vadd.s32 %v1772_v0, %v1770_v63  ;;  %v1524_v0 = vsel %vm1522_vm8, %v2648_v23, 5  ;;  %v1523_v63 = vsel %vm1521_vm9, %v2648_v23, 5  ;;  %vm1818_vm8 = vcmp.eq.s32.totalorder %v2768_v50, 2 }
0x1bac   :  { %v1535_v1 = vsel %vm1450_vm5, %v1524_v0, 2147483647 }
0x1bad   :  { %v1775_v10 = vsel %vm1774_vm13, %v1773_v6, %v1753_v9  ;;  %vm1776_vm1 = vcmp.eq.s32.totalorder %v2768_v50, %v1773_v6  ;;  %v1525_v6 = vsel %vm1450_vm5, %v1523_v63, 2147483647  ;;  %v1536_v9 = vrot.slane %v1535_v1, 4 }
0x1bae   :  { %v1777_v14 = vsel %vm1776_vm1, 1, %v2375_v32 }
0x1baf   :  { %v1778_v16 = vrot.slane %v1777_v14, 1  ;;  %v1779_v20 = vmul.u32 %v1777_v14, %v1642_v19  ;;  %vm1537_vm1 = vcmp.lt.s32.totalorder %v1535_v1, %v1536_v9 }
0x1bb0   :  { %v1538_v14 = vsel %vm1537_vm1, %v1535_v1, %v1536_v9 }
0x1bb1   :  { %v1780_v18 = vmul.u32 %v1778_v16, %v1652_v17  ;;  %v1539_v17 = vrot.slane %v1538_v14, 2 }
0x1bb3   :  { %v1781_v21 = vrot.slane %v1780_v18, 7  ;;  %vm1540_vm3 = vcmp.lt.s32.totalorder %v1538_v14, %v1539_v17 }
0x1bb4   :  { %v1541_v3 = vsel %vm1540_vm3, %v1538_v14, %v1539_v17 }
0x1bb5   :  { %v1782_v26 = vsel %vm319_vm2, %v1781_v21, %v1779_v20  ;;  %v1542_v24 = vrot.slane %v1541_v3, 1 }
0x1bb6   :  { %v1783_v27 = vsel %vm1721_vm0, %v1782_v26, 0 }
0x1bb7   :  { %v1785_v25 = vshrl.u32 %v1783_v27, 16  ;;  %v1784_v28 = vand.u32 65535, %v1783_v27  ;;  %vm1543_vm9 = vcmp.lt.s32.totalorder %v1541_v3, %v1542_v24 }
0x1bb8   :  { %v1544_v37 = vsel %vm1543_vm9, %v1541_v3, %v1542_v24 }
0x1bb9   :  { %v1787_v29 = vcvt.s32.f32 %v1785_v25  ;;  %v1786_v30 = vcvt.s32.f32 %v1784_v28 }
0x1bbb   :  { %1790 = vadd.xlane.f32.xlu0 %v1787_v29  ;;  %1788 = vadd.xlane.f32.xlu1 %v1786_v30 }
0x1c44   :  { %v1791_v44 = vpop.xlane.xlu0 %1790  ;;  %v1789_v40 = vpop.xlane.xlu1 %1788 }
0x1c45   :  { %v1793_v41 = vcvt.f32.s32 %v1791_v44  ;;  %v1792_v43 = vcvt.f32.s32 %v1789_v40  ;;  %v1470_v44 = vsel %vm1468_vm6, %v2648_v23, 5 }
0x1c47   :  { %v1794_v42 = vshll.u32 %v1793_v41, 16  ;;  %v1481_v41 = vsel %vm1450_vm5, %v1470_v44, 2147483647 }
0x1c48   :  { %v1482_v47 = vrot.slane %v1481_v41, 4 }
0x1c49   :  { %v1795_v49 = vadd.s32 %v1794_v42, %v1792_v43 }
0x1c4a   :  { %vm1483_vm11 = vcmp.lt.s32.totalorder %v1481_v41, %v1482_v47 }
0x1c4b   :  { %v1797_v51 = vsel %vm1796_vm10, %v1795_v49, %v1775_v10  ;;  %vm1798_vm13 = vcmp.eq.s32.totalorder %v2768_v50, %v1795_v49  ;;  %v1526_v10 = vrot.slane %v1525_v6, 4  ;;  %vm2863_vm10 = vcmp.eq.f32.partialorder %v2674_v46, %v2682_v58 }
0x1c4c   :  { %v1799_v15 = vsel %vm1798_vm13, 1, %v2375_v32  ;;  %v1469_v40 = vsel %vm2863_vm10, %v2648_v23, 5  ;;  %v1484_v43 = vsel %vm1483_vm11, %v1481_v41, %v1482_v47 }
0x1c4d   :  { %v1800_v11 = vrot.slane %v1799_v15, 1  ;;  %v1801_v59 = vmul.u32 %v1799_v15, %v1588_v56  ;;  %vm1527_vm7 = vcmp.lt.s32.totalorder %v1525_v6, %v1526_v10  ;;  %v1471_v31 = vsel %vm1450_vm5, %v1469_v40, 2147483647 }
0x1c4e   :  { %v1528_v16 = vsel %vm1527_vm7, %v1525_v6, %v1526_v10  ;;  %v1472_v42 = vrot.slane %v1471_v31, 4  ;;  %v1485_v49 = vrot.slane %v1484_v43, 2  ;;  %vm1840_vm5 = vcmp.eq.s32.totalorder %v2768_v50, 1 }
0x1c4f   :  { %v1802_v55 = vmul.u32 %v1800_v11, %v1598_v54  ;;  %v1529_v18 = vrot.slane %v1528_v16, 2 }
0x1c50   :  { %vm1473_vm13 = vcmp.lt.s32.totalorder %v1471_v31, %v1472_v42  ;;  %vm1486_vm15 = vcmp.lt.s32.totalorder %v1484_v43, %v1485_v49 }
0x1c51   :  { %v1803_v60 = vrot.slane %v1802_v55, 7  ;;  %vm1530_vm4 = vcmp.lt.s32.totalorder %v1528_v16, %v1529_v18  ;;  %v1474_v48 = vsel %vm1473_vm13, %v1471_v31, %v1472_v42  ;;  %v1487_v45 = vsel %vm1486_vm15, %v1484_v43, %v1485_v49 }
0x1c52   :  { %v1531_v5 = vsel %vm1530_vm4, %v1528_v16, %v1529_v18  ;;  %v1488_v23 = vrot.slane %v1487_v45, 1 }
0x1c53   :  { %v1804_v52 = vsel %vm319_vm2, %v1803_v60, %v1801_v59  ;;  %v1532_v27 = vrot.slane %v1531_v5, 1 }
0x1c54   :  { %v1805_v12 = vsel %vm1721_vm0, %v1804_v52, 0  ;;  %vm1489_vm6 = vcmp.lt.s32.totalorder %v1487_v45, %v1488_v23 }
0x1c55   :  { %v1807_v61 = vshrl.u32 %v1805_v12, 16  ;;  %v1806_v62 = vand.u32 65535, %v1805_v12  ;;  %vm1533_vm12 = vcmp.lt.s32.totalorder %v1531_v5, %v1532_v27  ;;  %v1490_v12 = vsel %vm1489_vm6, %v1487_v45, %v1488_v23 }
0x1c56   :  { %v1534_v4 = vsel %vm1533_vm12, %v1531_v5, %v1532_v27 }
0x1c57   :  { %v1809_v53 = vcvt.s32.f32 %v1807_v61  ;;  %v1808_v13 = vcvt.s32.f32 %v1806_v62 }
0x1c59   :  { %1812 = vadd.xlane.f32.xlu0 %v1809_v53  ;;  %1810 = vadd.xlane.f32.xlu1 %v1808_v13 }
0x1ce2   :  { %v1813_v22 = vpop.xlane.xlu0 %1812  ;;  %v1811_v19 = vpop.xlane.xlu1 %1810 }
0x1ce3   :  { %v1815_v20 = vcvt.f32.s32 %v1813_v22  ;;  %v1814_v26 = vcvt.f32.s32 %v1811_v19 }
0x1ce5   :  { %v1816_v21 = vshll.u32 %v1815_v20, 16 }
0x1ce7   :  { %v1817_v25 = vadd.s32 %v1816_v21, %v1814_v26 }
0x1ce9   :  { %v1819_v28 = vsel %vm1818_vm8, %v1817_v25, %v1797_v51  ;;  %vm1820_vm14 = vcmp.eq.s32.totalorder %v2768_v50, %v1817_v25  ;;  %v1475_v51 = vrot.slane %v1474_v48, 2 }
0x1cea   :  { %v1821_v29 = vsel %vm1820_vm14, 1, %v2375_v32 }
0x1ceb   :  { %v1822_v30 = vrot.slane %v1821_v29, 1  ;;  %v1823_v7 = vmul.u32 %v1821_v29, %v1534_v4  ;;  %vm1476_vm1 = vcmp.lt.s32.totalorder %v1474_v48, %v1475_v51 }
0x1cec   :  { %v1477_v46 = vsel %vm1476_vm1, %v1474_v48, %v1475_v51 }
0x1ced   :  { %v1824_v36 = vmul.u32 %v1822_v30, %v1544_v37  ;;  %v1478_v55 = vrot.slane %v1477_v46, 1 }
0x1cef   :  { %v1825_v33 = vrot.slane %v1824_v36, 7  ;;  %vm1479_vm3 = vcmp.lt.s32.totalorder %v1477_v46, %v1478_v55 }
0x1cf0   :  { %v1480_v62 = vsel %vm1479_vm3, %v1477_v46, %v1478_v55 }
0x1cf1   :  { %v1826_v8 = vsel %vm319_vm2, %v1825_v33, %v1823_v7 }
0x1cf2   :  { %v1827_v38 = vsel %vm1721_vm0, %v1826_v8, 0 }
0x1cf3   :  { %v1829_v34 = vshrl.u32 %v1827_v38, 16  ;;  %v1828_v35 = vand.u32 65535, %v1827_v38 }
0x1cf5   :  { %v1831_v39 = vcvt.s32.f32 %v1829_v34  ;;  %v1830_v2 = vcvt.s32.f32 %v1828_v35 }
0x1cf7   :  { %1834 = vadd.xlane.f32.xlu0 %v1831_v39  ;;  %1832 = vadd.xlane.f32.xlu1 %v1830_v2 }
0x1d80   :  { %v1835_v57 = vpop.xlane.xlu0 %1834  ;;  %v1833_v15 = vpop.xlane.xlu1 %1832 }
0x1d81   :  { %v1837_v11 = vcvt.f32.s32 %v1835_v57  ;;  %v1836_v54 = vcvt.f32.s32 %v1833_v15 }
0x1d83   :  { %v1838_v58 = vshll.u32 %v1837_v11, 16 }
0x1d85   :  { %v1839_v56 = vadd.s32 %v1838_v58, %v1836_v54 }
0x1d87   :  { %vm1842_vm7 = vcmp.eq.s32.totalorder %v2768_v50, %v1839_v56  ;;  %v1841_v59 = vsel %vm1840_vm5, %v1839_v56, %v1819_v28 }
0x1d88   :  { %v1843_v60 = vsel %vm1842_vm7, 1, %v2375_v32 }
0x1d89   :  { %v1844_v52 = vrot.slane %v1843_v60, 1  ;;  %v1845_v53 = vmul.u32 %v1843_v60, %v1480_v62 }
0x1d8b   :  { %v1846_v61 = vmul.u32 %v1844_v52, %v1490_v12 }
0x1d8d   :  { %v1847_v13 = vrot.slane %v1846_v61, 7 }
0x1d8f   :  { %v1848_v0 = vsel %vm319_vm2, %v1847_v13, %v1845_v53 }
0x1d90   :  { %v1849_v63 = vsel %vm1721_vm0, %v1848_v0, 0 }
0x1d91   :  { %v1851_v1 = vshrl.u32 %v1849_v63, 16  ;;  %v1850_v6 = vand.u32 65535, %v1849_v63 }
0x1d93   :  { %v1853_v9 = vcvt.s32.f32 %v1851_v1  ;;  %v1852_v10 = vcvt.s32.f32 %v1850_v6 }
0x1d95   :  { %1856 = vadd.xlane.f32.xlu0 %v1853_v9  ;;  %1854 = vadd.xlane.f32.xlu1 %v1852_v10 }
0x1d96   :  { %2320 = shalt.err (!%p2317_p10)
}
0x1d97   :  { %1875 = dma.vmem_to_hbm [thread:$0]  %s1873_s24, 32, %s2861_s9, [#allocation4]   ;;  %vm1862_vm2 = vcmp.eq.s32.totalorder %v2768_v50, 0  ;;  %vm1864_vm0 = vcmask 41984  }
0x1d98   :  { %s2377_s28 = smov [#allocation11]  }
0x1d99   :  { %s1882_s1 = sshll.u32 %s2377_s28, 4  ;;  %s1883_s1 = int_to_ptr.vmem [resolvable:$true] %s1882_s1 }
0x1d9a   :  { %s2329_s29 = scalar_lea.vmem %s1883_s1, 32  ;;  %p2334_p12 = scmp.lt.s32.totalorder %s1883_s1, %s1883_s1 }
0x1d9b   :  { %p2330_p11 = scmp.ne.s32.totalorder %s1883_s1, %s2329_s29  ;;  %p2335_p13 = scmp.lt.s32.totalorder %s2329_s29, %s2329_s29 }
0x1d9d   :  { %p2336_p0 = por %p2335_p13, %p2334_p12 }
0x1d9f   :  { %p2337_p1 = pnand %p2336_p0, %p2330_p11 }
0x1e1e   :  { %v1857_v32 = vpop.xlane.xlu0 %1856  ;;  %v1855_v14 = vpop.xlane.xlu1 %1854 }
0x1e1f   :  { %v1859_v16 = vcvt.f32.s32 %v1857_v32  ;;  %v1858_v18 = vcvt.f32.s32 %v1855_v14 }
0x1e21   :  { %v1860_v17 = vshll.u32 %v1859_v16, 16 }
0x1e23   :  { %v1861_v3 = vadd.s32 %v1860_v17, %v1858_v18 }
0x1e25   :  { %v1863_v22 = vsel %vm1862_vm2, %v1861_v3, %v1841_v59 }
0x1e26   :  { %1865 = vst.msk [vmem:[#allocation11] sm:$0x3] %vm1864_vm0, %v1863_v22 }
0x1e27   :  { %2340 = shalt.err (!%p2337_p1)
}
0x1e28   :  { %1885 = dma.vmem_to_hbm [thread:$0]  %s1883_s1, 32, %s2862_s10, [#allocation12]  }
0x1e29   :  { %2355 = dma.done.wait [#allocation4], 32  }
0x1e2a   :  { %2356 = vsyncadd [#allocation4], 4294967264 }
0x1e2b   :  { %2357 = dma.done.wait [#allocation12], 32  }
0x1e2c   :  { %2358 = vsyncadd [#allocation12], 4294967264 }
0x1e2d   :  { %1892 = vsyncpa [#allocation3], 1 }
0x1e2e   :  { %1893 = vsyncpa [#allocation6], 1 }
0x1e2f   :  { %1894 = vsyncpa [#allocation9], 1 }
0x1e30   :  { %1895 = vsyncpa [#allocation4], 1 }
0x1e31   :  { %1896 = vsyncpa [#allocation12], 1 }

</bundles_post_ra>
